<compile_context>
chip_gen: v6e
topology: v6e:2x2x1
jax: 0.10.0
libtpu: 0.0.40
codegen_flags: <defaults>
</compile_context>

<pallas_src>
import functools

import jax
import jax.numpy as jnp
from jax.experimental import pallas as pl
from jax.experimental.pallas import tpu as pltpu

LANE = 128
_TM_CANDIDATES = (4096, 2048, 1024, 512, 256, 128, 64, 32, 16, 8)
_VMEM_BUDGET = 28 * 1024 * 1024  # stay under the 32 MiB default scoped VMEM limit


def _pick_tm(m, k, n, out_itemsize):
    """Largest row tile whose double-buffered bf16 A block + resident bf16 weights +
    double-buffered output block fit the VMEM budget.  All candidates are multiples of
    8; if the tile covers the whole matrix we use the exact row count (full-dim blocks
    are always legal)."""
    tm = _TM_CANDIDATES[-1]
    for cand in _TM_CANDIDATES:
        vmem = 2 * cand * k * 2 + 2 * k * n * 2 + 2 * cand * n * out_itemsize
        if vmem <= _VMEM_BUDGET:
            tm = cand
            break
    return min(tm, m)


# ----------------------------------------------------------------------------
# Pallas kernels
# ----------------------------------------------------------------------------
def _apply_act(y, act, neg_slope):
    if act == "lrelu":
        return jnp.where(y >= 0, y, neg_slope * y)
    if act == "sigmoid":
        return jax.nn.sigmoid(y)
    return y


def _conv_act_kernel(a_ref, b_ref, bias_ref, o_ref, *, act, neg_slope):
    """One M tile of (tm,K)@(K,N) with the full weight resident in VMEM; bias +
    activation fused into the store (f32 math, cast at the store)."""
    y = jnp.dot(a_ref[...], b_ref[...], preferred_element_type=jnp.float32)
    y = y + bias_ref[...]
    o_ref[...] = _apply_act(y, act, neg_slope).astype(o_ref.dtype)


def _conv_stats_kernel(a_ref, b_ref, bias_ref, o_ref, sum_ref, sq_ref, *, n_rows, tm):
    """Same matmul + bias; additionally writes this M tile's per-channel sum and
    sum-of-squares as per-tile partials (reduced later in JAX), so the M grid axis
    remains 'parallel'.  Out-of-range rows of the partial last tile are masked."""
    y = jnp.dot(a_ref[...], b_ref[...], preferred_element_type=jnp.float32)
    y = y + bias_ref[...]
    o_ref[...] = y.astype(o_ref.dtype)

    rows = jax.lax.broadcasted_iota(jnp.int32, y.shape, 0) + pl.program_id(0) * tm
    ym = jnp.where(rows < n_rows, y, 0.0)
    sum_ref[...] = jnp.sum(ym, axis=0, keepdims=True).reshape(1, 1, -1)
    sq_ref[...] = jnp.sum(ym * ym, axis=0, keepdims=True).reshape(1, 1, -1)


# ----------------------------------------------------------------------------
# Kernel wrappers
# ----------------------------------------------------------------------------
def _conv_operands(a, w2d, bias):
    m, k = a.shape
    k2, n = w2d.shape
    assert k == k2
    return (a.astype(jnp.bfloat16), w2d.astype(jnp.bfloat16),
            bias.reshape(1, n).astype(jnp.float32), m, k, n)


def conv_matmul_act(a, w2d, bias, act="none", neg_slope=0.2, out_dtype=jnp.bfloat16):
    """y = act((M,K)@(K,N) + bias).  Single 'parallel' grid axis over M; weights and
    bias have constant block indices (fetched once, resident in VMEM)."""
    a, b, bias2, m, k, n = _conv_operands(a, w2d, bias)
    tm = _pick_tm(m, k, n, jnp.dtype(out_dtype).itemsize)
    return pl.pallas_call(
        functools.partial(_conv_act_kernel, act=act, neg_slope=neg_slope),
        out_shape=jax.ShapeDtypeStruct((m, n), out_dtype),
        grid_spec=pltpu.PrefetchScalarGridSpec(
            num_scalar_prefetch=0,
            grid=(pl.cdiv(m, tm),),
            in_specs=[
                pl.BlockSpec((tm, k), lambda i: (i, 0)),
                pl.BlockSpec((k, n), lambda i: (0, 0)),   # resident weights
                pl.BlockSpec((1, n), lambda i: (0, 0)),   # resident bias
            ],
            out_specs=pl.BlockSpec((tm, n), lambda i: (i, 0)),
        ),
        compiler_params=pltpu.CompilerParams(
            dimension_semantics=("parallel",),
            allow_input_fusion=[True, False, False],      # let XLA fuse im2col producer
        ),
    )(a, b, bias2)


def conv_matmul_stats(a, w2d, bias, out_dtype=jnp.bfloat16):
    """y = (M,K)@(K,N) + bias, plus fused per-channel BatchNorm batch statistics.

    Returns (y (M,N), sum (N,), sumsq (N,)); stats are per-M-tile partials reduced in
    JAX so the grid stays fully parallel."""
    a, b, bias2, m, k, n = _conv_operands(a, w2d, bias)
    tm = _pick_tm(m, k, n, jnp.dtype(out_dtype).itemsize)
    nt = pl.cdiv(m, tm)
    y, s, q = pl.pallas_call(
        functools.partial(_conv_stats_kernel, n_rows=m, tm=tm),
        out_shape=(
            jax.ShapeDtypeStruct((m, n), out_dtype),
            jax.ShapeDtypeStruct((nt, 1, n), jnp.float32),
            jax.ShapeDtypeStruct((nt, 1, n), jnp.float32),
        ),
        grid_spec=pltpu.PrefetchScalarGridSpec(
            num_scalar_prefetch=0,
            grid=(nt,),
            in_specs=[
                pl.BlockSpec((tm, k), lambda i: (i, 0)),
                pl.BlockSpec((k, n), lambda i: (0, 0)),   # resident weights
                pl.BlockSpec((1, n), lambda i: (0, 0)),   # resident bias
            ],
            out_specs=(
                pl.BlockSpec((tm, n), lambda i: (i, 0)),
                pl.BlockSpec((1, 1, n), lambda i: (i, 0, 0)),
                pl.BlockSpec((1, 1, n), lambda i: (i, 0, 0)),
            ),
        ),
        compiler_params=pltpu.CompilerParams(
            dimension_semantics=("parallel",),
            allow_input_fusion=[True, False, False],
        ),
    )(a, b, bias2)
    return y, jnp.sum(s, axis=(0, 1)), jnp.sum(q, axis=(0, 1))


# ----------------------------------------------------------------------------
# Conv glue (JAX): zero-pad + im2col feeding the Pallas matmul
# ----------------------------------------------------------------------------
def pad_zero(x, p):
    return jnp.pad(x, ((0, 0), (p, p), (p, p), (0, 0)))


def _im2col(x, kh, kw, stride):
    """x: (N,H,W,C) already padded -> bf16 (N*OH*OW, kh*kw*C), OH, OW.
    Column order is tap-major / channel-minor, matching w.reshape(kh*kw*cin, cout)."""
    n, h, w, c = x.shape
    oh = (h - kh) // stride + 1
    ow = (w - kw) // stride + 1
    cols = []
    for i in range(kh):
        for j in range(kw):
            cols.append(x[:, i:i + stride * oh:stride, j:j + stride * ow:stride, :])
    patches = jnp.stack(cols, axis=3)                       # (N, OH, OW, kh*kw, C)
    a = patches.reshape(n * oh * ow, kh * kw * c).astype(jnp.bfloat16)
    return a, oh, ow


# ----------------------------------------------------------------------------
# NLayerDiscriminator: parameters + forward
# ----------------------------------------------------------------------------
def init_nlayer_discriminator(key, input_nc, ndf=64, n_layers=3, use_sigmoid=False):
    """Returns (params, cfg).  params: arrays only (jit-friendly pytree);
    cfg: static per-layer python config (stride / has_bn / act)."""
    keys = iter(jax.random.split(key, 4 * (n_layers + 2) + 4))

    def conv_w(cin, cout, k=4):
        scale = (k * k * cin) ** -0.5
        return jax.random.normal(next(keys), (k, k, cin, cout), jnp.float32) * scale

    def bias_init(c):
        return jax.random.normal(next(keys), (c,), jnp.float32) * 0.01

    layers, cfg = [], []

    # block 0: Conv(k4,s2,p2) + LeakyReLU(0.2)
    layers.append({"w": conv_w(input_nc, ndf), "b": bias_init(ndf)})
    cfg.append({"stride": 2, "has_bn": False, "act": "lrelu"})

    nf = ndf
    # blocks 1 .. n_layers-1: Conv(k4,s2,p2) + BN + LeakyReLU(0.2)
    for _ in range(1, n_layers):
        nf_prev, nf = nf, min(nf * 2, 512)
        layers.append({"w": conv_w(nf_prev, nf), "b": bias_init(nf),
                       "gamma": jnp.ones((nf,), jnp.float32),
                       "beta": jnp.zeros((nf,), jnp.float32)})
        cfg.append({"stride": 2, "has_bn": True, "act": "lrelu"})

    # block n_layers: Conv(k4,s1,p2) + BN + LeakyReLU(0.2)
    nf_prev, nf = nf, min(nf * 2, 512)
    layers.append({"w": conv_w(nf_prev, nf), "b": bias_init(nf),
                   "gamma": jnp.ones((nf,), jnp.float32),
                   "beta": jnp.zeros((nf,), jnp.float32)})
    cfg.append({"stride": 1, "has_bn": True, "act": "lrelu"})

    # block n_layers+1: Conv(k4,s1,p2) -> 1 channel (+ optional Sigmoid)
    layers.append({"w": conv_w(nf, 1), "b": bias_init(1)})
    cfg.append({"stride": 1, "has_bn": False,
                "act": "sigmoid" if use_sigmoid else "none"})

    return {"layers": layers}, tuple(cfg)


def nlayer_discriminator_forward(cfg, params, x_nchw, get_interm_feat=False):
    """Forward pass.  Input/output NCHW float32 (PyTorch convention); NHWC inside."""
    x = jnp.transpose(x_nchw.astype(jnp.float32), (0, 2, 3, 1))  # NHWC
    n_img = x.shape[0]
    feats = []
    n_blocks = len(cfg)
    for li, (lc, lp) in enumerate(zip(cfg, params["layers"])):
        is_final = (li == n_blocks - 1)
        xp = pad_zero(x, 2)                              # Conv2d padding=2
        a, oh, ow = _im2col(xp, 4, 4, lc["stride"])       # bf16 (M, 16*Cin)
        cout = lp["w"].shape[-1]
        w2d = lp["w"].reshape(-1, cout)

        if lc["has_bn"]:
            # Conv matmul + bias with fused per-tile batch statistics (one kernel).
            y2d, s, q = conv_matmul_stats(a, w2d, lp["b"], out_dtype=jnp.bfloat16)
            m_rows = a.shape[0]
            mean = s / m_rows
            var = jnp.maximum(q / m_rows - mean * mean, 0.0)   # clamp >= 0
            inv_std = jax.lax.rsqrt(var + 1e-5)
            scale = lp["gamma"] * inv_std
            shift = lp["beta"] - mean * scale
            y = y2d.reshape(n_img, oh, ow, cout).astype(jnp.float32)
            # BN affine + LeakyReLU: expressed in JAX so XLA fuses it into the next
            # layer's pad + im2col gather (no standalone HBM pass over the features).
            t = y * scale + shift
            x = jnp.where(t >= 0, t, 0.2 * t)
        elif is_final:
            # Final conv: pad cout to 128 lanes (lane-dense MXU/store), slice col 0.
            if cout < LANE:
                pad_n = LANE - cout
                w2d_p = jnp.pad(w2d, ((0, 0), (0, pad_n)))
                b_p = jnp.pad(lp["b"], (0, pad_n))
                y2d = conv_matmul_act(a, w2d_p, b_p, act=lc["act"],
                                      out_dtype=jnp.float32)[:, :cout]
            else:
                y2d = conv_matmul_act(a, w2d, lp["b"], act=lc["act"],
                                      out_dtype=jnp.float32)
            x = y2d.reshape(n_img, oh, ow, cout)
        else:
            # Conv + bias + LeakyReLU fused in the kernel epilogue; bf16 intermediate.
            y2d = conv_matmul_act(a, w2d, lp["b"], act=lc["act"], neg_slope=0.2,
                                  out_dtype=jnp.bfloat16)
            x = y2d.reshape(n_img, oh, ow, cout)

        if get_interm_feat:
            feats.append(jnp.transpose(x.astype(jnp.float32), (0, 3, 1, 2)))

    if get_interm_feat:
        return feats
    return jnp.transpose(x.astype(jnp.float32), (0, 3, 1, 2))   # back to NCHW


if __name__ == "__main__":
    key = jax.random.PRNGKey(0)
    kparam, kx = jax.random.split(key)

    # Small config consistent with the module signature.
    input_nc, ndf, n_layers = 3, 8, 3
    params, cfg = init_nlayer_discriminator(kparam, input_nc, ndf=ndf,
                                            n_layers=n_layers, use_sigmoid=False)

    x = jax.random.normal(kx, (2, input_nc, 16, 16), jnp.float32)

    fwd = jax.jit(functools.partial(nlayer_discriminator_forward, cfg))
    y = jax.block_until_ready(fwd(params, x))

    # k=4, p=2 convs: 16 -> 9 -> 5 -> 3 (stride 2), then 3 -> 4 -> 5 (stride 1), C=1.
    assert y.shape == (2, 1, 5, 5), y.shape
    assert bool(jnp.all(jnp.isfinite(y)))
    print("KERNEL_OK")
</pallas_src>

<mosaic_0001>
module attributes {stable_mosaic.version = 11 : i64} {
  func.func @_conv_act_kernel(%arg0: i32, %arg1: memref<162x48xbf16, #tpu.memory_space<vmem>>, %arg2: memref<48x8xbf16, #tpu.memory_space<vmem>>, %arg3: memref<1x8xf32, #tpu.memory_space<vmem>>, %arg4: memref<162x8xbf16, #tpu.memory_space<vmem>>) attributes {dimension_semantics = [#tpu.dimension_semantics<parallel>], iteration_bounds = array<i64: 1>, scalar_prefetch = 0 : i64, scratch_operands = 0 : i64, tpu.core_type = #tpu.core_type<tc>, window_params = [{transform_indices = @transform_0, window_bounds = array<i64: 162, 48>}, {pipeline_mode = #tpu.pipeline_mode<synchronous>, transform_indices = @transform_1, window_bounds = array<i64: 48, 8>}, {pipeline_mode = #tpu.pipeline_mode<synchronous>, transform_indices = @transform_2, window_bounds = array<i64: 1, 8>}, {transform_indices = @transform_3, window_bounds = array<i64: 162, 8>}]} {
    %c0 = arith.constant 0 : index
    %c0_0 = arith.constant 0 : index
    %0 = vector.load %arg1[%c0, %c0_0] : memref<162x48xbf16, #tpu.memory_space<vmem>>, vector<162x48xbf16>
    %c0_1 = arith.constant 0 : index
    %c0_2 = arith.constant 0 : index
    %1 = vector.load %arg2[%c0_1, %c0_2] : memref<48x8xbf16, #tpu.memory_space<vmem>>, vector<48x8xbf16>
    %cst = arith.constant dense<0.000000e+00> : vector<162x8xf32>
    %2 = tpu.matmul %0, %1, %cst {dimension_numbers = #tpu.dot_dimension_numbers<[1], [0], [0], [1], [0, 0, 1, 1], [], []>} : vector<162x48xbf16>, vector<48x8xbf16>, vector<162x8xf32> -> vector<162x8xf32>
    %c0_3 = arith.constant 0 : index
    %c0_4 = arith.constant 0 : index
    %3 = vector.load %arg3[%c0_3, %c0_4] : memref<1x8xf32, #tpu.memory_space<vmem>>, vector<1x8xf32>
    %4 = vector.broadcast %3 : vector<1x8xf32> to vector<162x8xf32>
    %5 = arith.addf %2, %4 : vector<162x8xf32>
    %cst_5 = arith.constant 0.000000e+00 : f32
    %6 = vector.broadcast %cst_5 : f32 to vector<162x8xf32>
    %7 = arith.cmpf oge, %5, %6 : vector<162x8xf32>
    %cst_6 = arith.constant 2.000000e-01 : f32
    %8 = vector.broadcast %cst_6 : f32 to vector<162x8xf32>
    %9 = arith.mulf %8, %5 : vector<162x8xf32>
    %10 = arith.select %7, %5, %9 : vector<162x8xi1>, vector<162x8xf32>
    %11 = arith.truncf %10 : vector<162x8xf32> to vector<162x8xbf16>
    %c0_7 = arith.constant 0 : index
    %c0_8 = arith.constant 0 : index
    %12 = vector.load %arg4[%c0_7, %c0_8] : memref<162x8xbf16, #tpu.memory_space<vmem>>, vector<162x8xbf16>
    tpu.vector_store %arg4[%c0_7, %c0_8], %11 {strides = array<i32>} : memref<162x8xbf16, #tpu.memory_space<vmem>>, vector<162x8xbf16>,
    return
  }
  func.func @transform_0(%arg0: i32) -> (i32, i32) {
    %c0_i32 = arith.constant 0 : i32
    %c0_i32_0 = arith.constant 0 : i32
    return %arg0, %c0_i32 : i32, i32
  }
  func.func @transform_1(%arg0: i32) -> (i32, i32) {
    %c0_i32 = arith.constant 0 : i32
    %c0_i32_0 = arith.constant 0 : i32
    %c0_i32_1 = arith.constant 0 : i32
    return %c0_i32, %c0_i32_0 : i32, i32
  }
  func.func @transform_2(%arg0: i32) -> (i32, i32) {
    %c0_i32 = arith.constant 0 : i32
    %c0_i32_0 = arith.constant 0 : i32
    %c0_i32_1 = arith.constant 0 : i32
    return %c0_i32, %c0_i32_0 : i32, i32
  }
  func.func @transform_3(%arg0: i32) -> (i32, i32) {
    %c0_i32 = arith.constant 0 : i32
    %c0_i32_0 = arith.constant 0 : i32
    return %arg0, %c0_i32 : i32, i32
  }
}

module attributes {stable_mosaic.version = 11 : i64} {
  func.func @_conv_stats_kernel(%arg0: i32, %arg1: memref<50x128xbf16, #tpu.memory_space<vmem>>, %arg2: memref<128x16xbf16, #tpu.memory_space<vmem>>, %arg3: memref<1x16xf32, #tpu.memory_space<vmem>>, %arg4: memref<50x16xbf16, #tpu.memory_space<vmem>>, %arg5: memref<1x1x16xf32, #tpu.memory_space<vmem>>, %arg6: memref<1x1x16xf32, #tpu.memory_space<vmem>>) attributes {dimension_semantics = [#tpu.dimension_semantics<parallel>], iteration_bounds = array<i64: 1>, scalar_prefetch = 0 : i64, scratch_operands = 0 : i64, tpu.core_type = #tpu.core_type<tc>, window_params = [{transform_indices = @transform_0, window_bounds = array<i64: 50, 128>}, {pipeline_mode = #tpu.pipeline_mode<synchronous>, transform_indices = @transform_1, window_bounds = array<i64: 128, 16>}, {pipeline_mode = #tpu.pipeline_mode<synchronous>, transform_indices = @transform_2, window_bounds = array<i64: 1, 16>}, {transform_indices = @transform_3, window_bounds = array<i64: 50, 16>}, {transform_indices = @transform_4, window_bounds = array<i64: 1, 1, 16>}, {transform_indices = @transform_5, window_bounds = array<i64: 1, 1, 16>}]} {
    %c0 = arith.constant 0 : index
    %c0_0 = arith.constant 0 : index
    %0 = vector.load %arg1[%c0, %c0_0] : memref<50x128xbf16, #tpu.memory_space<vmem>>, vector<50x128xbf16>
    %c0_1 = arith.constant 0 : index
    %c0_2 = arith.constant 0 : index
    %1 = vector.load %arg2[%c0_1, %c0_2] : memref<128x16xbf16, #tpu.memory_space<vmem>>, vector<128x16xbf16>
    %cst = arith.constant dense<0.000000e+00> : vector<50x16xf32>
    %2 = tpu.matmul %0, %1, %cst {dimension_numbers = #tpu.dot_dimension_numbers<[1], [0], [0], [1], [0, 0, 1, 1], [], []>} : vector<50x128xbf16>, vector<128x16xbf16>, vector<50x16xf32> -> vector<50x16xf32>
    %c0_3 = arith.constant 0 : index
    %c0_4 = arith.constant 0 : index
    %3 = vector.load %arg3[%c0_3, %c0_4] : memref<1x16xf32, #tpu.memory_space<vmem>>, vector<1x16xf32>
    %4 = vector.broadcast %3 : vector<1x16xf32> to vector<50x16xf32>
    %5 = arith.addf %2, %4 : vector<50x16xf32>
    %6 = arith.truncf %5 : vector<50x16xf32> to vector<50x16xbf16>
    %c0_5 = arith.constant 0 : index
    %c0_6 = arith.constant 0 : index
    %7 = vector.load %arg4[%c0_5, %c0_6] : memref<50x16xbf16, #tpu.memory_space<vmem>>, vector<50x16xbf16>
    tpu.vector_store %arg4[%c0_5, %c0_6], %6 {strides = array<i32>} : memref<50x16xbf16, #tpu.memory_space<vmem>>, vector<50x16xbf16>,
    %8 = tpu.iota {dimensions = array<i32: 0>} : vector<50x16xi32>
    %c50_i32 = arith.constant 50 : i32
    %9 = arith.muli %arg0, %c50_i32 : i32
    %10 = vector.broadcast %9 : i32 to vector<50x16xi32>
    %11 = arith.addi %8, %10 : vector<50x16xi32>
    %c50_i32_7 = arith.constant 50 : i32
    %12 = vector.broadcast %c50_i32_7 : i32 to vector<50x16xi32>
    %13 = arith.cmpi slt, %11, %12 : vector<50x16xi32>
    %cst_8 = arith.constant 0.000000e+00 : f32
    %14 = vector.broadcast %cst_8 : f32 to vector<50x16xf32>
    %15 = arith.select %13, %5, %14 : vector<50x16xi1>, vector<50x16xf32>
    %cst_9 = arith.constant dense<0.000000e+00> : vector<16xf32>
    %16 = vector.multi_reduction <add>, %15, %cst_9 [0] : vector<50x16xf32> to vector<16xf32>
    %17 = vector.shape_cast %16 : vector<16xf32> to vector<1x16xf32>
    %18 = vector.shape_cast %17 : vector<1x16xf32> to vector<1x1x16xf32>
    %c0_10 = arith.constant 0 : index
    %c0_11 = arith.constant 0 : index
    %c0_12 = arith.constant 0 : index
    %19 = vector.load %arg5[%c0_10, %c0_11, %c0_12] : memref<1x1x16xf32, #tpu.memory_space<vmem>>, vector<1x1x16xf32>
    tpu.vector_store %arg5[%c0_10, %c0_11, %c0_12], %18 {strides = array<i32>} : memref<1x1x16xf32, #tpu.memory_space<vmem>>, vector<1x1x16xf32>,
    %20 = arith.mulf %15, %15 : vector<50x16xf32>
    %cst_13 = arith.constant dense<0.000000e+00> : vector<16xf32>
    %21 = vector.multi_reduction <add>, %20, %cst_13 [0] : vector<50x16xf32> to vector<16xf32>
    %22 = vector.shape_cast %21 : vector<16xf32> to vector<1x16xf32>
    %23 = vector.shape_cast %22 : vector<1x16xf32> to vector<1x1x16xf32>
    %c0_14 = arith.constant 0 : index
    %c0_15 = arith.constant 0 : index
    %c0_16 = arith.constant 0 : index
    %24 = vector.load %arg6[%c0_14, %c0_15, %c0_16] : memref<1x1x16xf32, #tpu.memory_space<vmem>>, vector<1x1x16xf32>
    tpu.vector_store %arg6[%c0_14, %c0_15, %c0_16], %23 {strides = array<i32>} : memref<1x1x16xf32, #tpu.memory_space<vmem>>, vector<1x1x16xf32>,
    return
  }
  func.func @transform_0(%arg0: i32) -> (i32, i32) {
    %c0_i32 = arith.constant 0 : i32
    %c0_i32_0 = arith.constant 0 : i32
    return %arg0, %c0_i32 : i32, i32
  }
  func.func @transform_1(%arg0: i32) -> (i32, i32) {
    %c0_i32 = arith.constant 0 : i32
    %c0_i32_0 = arith.constant 0 : i32
    %c0_i32_1 = arith.constant 0 : i32
    return %c0_i32, %c0_i32_0 : i32, i32
  }
  func.func @transform_2(%arg0: i32) -> (i32, i32) {
    %c0_i32 = arith.constant 0 : i32
    %c0_i32_0 = arith.constant 0 : i32
    %c0_i32_1 = arith.constant 0 : i32
    return %c0_i32, %c0_i32_0 : i32, i32
  }
  func.func @transform_3(%arg0: i32) -> (i32, i32) {
    %c0_i32 = arith.constant 0 : i32
    %c0_i32_0 = arith.constant 0 : i32
    return %arg0, %c0_i32 : i32, i32
  }
  func.func @transform_4(%arg0: i32) -> (i32, i32, i32) {
    %c0_i32 = arith.constant 0 : i32
    %c0_i32_0 = arith.constant 0 : i32
    %c0_i32_1 = arith.constant 0 : i32
    return %arg0, %c0_i32, %c0_i32_0 : i32, i32, i32
  }
  func.func @transform_5(%arg0: i32) -> (i32, i32, i32) {
    %c0_i32 = arith.constant 0 : i32
    %c0_i32_0 = arith.constant 0 : i32
    %c0_i32_1 = arith.constant 0 : i32
    return %arg0, %c0_i32, %c0_i32_0 : i32, i32, i32
  }
}

module attributes {stable_mosaic.version = 11 : i64} {
  func.func @_conv_stats_kernel(%arg0: i32, %arg1: memref<18x256xbf16, #tpu.memory_space<vmem>>, %arg2: memref<256x32xbf16, #tpu.memory_space<vmem>>, %arg3: memref<1x32xf32, #tpu.memory_space<vmem>>, %arg4: memref<18x32xbf16, #tpu.memory_space<vmem>>, %arg5: memref<1x1x32xf32, #tpu.memory_space<vmem>>, %arg6: memref<1x1x32xf32, #tpu.memory_space<vmem>>) attributes {dimension_semantics = [#tpu.dimension_semantics<parallel>], iteration_bounds = array<i64: 1>, scalar_prefetch = 0 : i64, scratch_operands = 0 : i64, tpu.core_type = #tpu.core_type<tc>, window_params = [{transform_indices = @transform_0, window_bounds = array<i64: 18, 256>}, {pipeline_mode = #tpu.pipeline_mode<synchronous>, transform_indices = @transform_1, window_bounds = array<i64: 256, 32>}, {pipeline_mode = #tpu.pipeline_mode<synchronous>, transform_indices = @transform_2, window_bounds = array<i64: 1, 32>}, {transform_indices = @transform_3, window_bounds = array<i64: 18, 32>}, {transform_indices = @transform_4, window_bounds = array<i64: 1, 1, 32>}, {transform_indices = @transform_5, window_bounds = array<i64: 1, 1, 32>}]} {
    %c0 = arith.constant 0 : index
    %c0_0 = arith.constant 0 : index
    %0 = vector.load %arg1[%c0, %c0_0] : memref<18x256xbf16, #tpu.memory_space<vmem>>, vector<18x256xbf16>
    %c0_1 = arith.constant 0 : index
    %c0_2 = arith.constant 0 : index
    %1 = vector.load %arg2[%c0_1, %c0_2] : memref<256x32xbf16, #tpu.memory_space<vmem>>, vector<256x32xbf16>
    %cst = arith.constant dense<0.000000e+00> : vector<18x32xf32>
    %2 = tpu.matmul %0, %1, %cst {dimension_numbers = #tpu.dot_dimension_numbers<[1], [0], [0], [1], [0, 0, 1, 1], [], []>} : vector<18x256xbf16>, vector<256x32xbf16>, vector<18x32xf32> -> vector<18x32xf32>
    %c0_3 = arith.constant 0 : index
    %c0_4 = arith.constant 0 : index
    %3 = vector.load %arg3[%c0_3, %c0_4] : memref<1x32xf32, #tpu.memory_space<vmem>>, vector<1x32xf32>
    %4 = vector.broadcast %3 : vector<1x32xf32> to vector<18x32xf32>
    %5 = arith.addf %2, %4 : vector<18x32xf32>
    %6 = arith.truncf %5 : vector<18x32xf32> to vector<18x32xbf16>
    %c0_5 = arith.constant 0 : index
    %c0_6 = arith.constant 0 : index
    %7 = vector.load %arg4[%c0_5, %c0_6] : memref<18x32xbf16, #tpu.memory_space<vmem>>, vector<18x32xbf16>
    tpu.vector_store %arg4[%c0_5, %c0_6], %6 {strides = array<i32>} : memref<18x32xbf16, #tpu.memory_space<vmem>>, vector<18x32xbf16>,
    %8 = tpu.iota {dimensions = array<i32: 0>} : vector<18x32xi32>
    %c18_i32 = arith.constant 18 : i32
    %9 = arith.muli %arg0, %c18_i32 : i32
    %10 = vector.broadcast %9 : i32 to vector<18x32xi32>
    %11 = arith.addi %8, %10 : vector<18x32xi32>
    %c18_i32_7 = arith.constant 18 : i32
    %12 = vector.broadcast %c18_i32_7 : i32 to vector<18x32xi32>
    %13 = arith.cmpi slt, %11, %12 : vector<18x32xi32>
    %cst_8 = arith.constant 0.000000e+00 : f32
    %14 = vector.broadcast %cst_8 : f32 to vector<18x32xf32>
    %15 = arith.select %13, %5, %14 : vector<18x32xi1>, vector<18x32xf32>
    %cst_9 = arith.constant dense<0.000000e+00> : vector<32xf32>
    %16 = vector.multi_reduction <add>, %15, %cst_9 [0] : vector<18x32xf32> to vector<32xf32>
    %17 = vector.shape_cast %16 : vector<32xf32> to vector<1x32xf32>
    %18 = vector.shape_cast %17 : vector<1x32xf32> to vector<1x1x32xf32>
    %c0_10 = arith.constant 0 : index
    %c0_11 = arith.constant 0 : index
    %c0_12 = arith.constant 0 : index
    %19 = vector.load %arg5[%c0_10, %c0_11, %c0_12] : memref<1x1x32xf32, #tpu.memory_space<vmem>>, vector<1x1x32xf32>
    tpu.vector_store %arg5[%c0_10, %c0_11, %c0_12], %18 {strides = array<i32>} : memref<1x1x32xf32, #tpu.memory_space<vmem>>, vector<1x1x32xf32>,
    %20 = arith.mulf %15, %15 : vector<18x32xf32>
    %cst_13 = arith.constant dense<0.000000e+00> : vector<32xf32>
    %21 = vector.multi_reduction <add>, %20, %cst_13 [0] : vector<18x32xf32> to vector<32xf32>
    %22 = vector.shape_cast %21 : vector<32xf32> to vector<1x32xf32>
    %23 = vector.shape_cast %22 : vector<1x32xf32> to vector<1x1x32xf32>
    %c0_14 = arith.constant 0 : index
    %c0_15 = arith.constant 0 : index
    %c0_16 = arith.constant 0 : index
    %24 = vector.load %arg6[%c0_14, %c0_15, %c0_16] : memref<1x1x32xf32, #tpu.memory_space<vmem>>, vector<1x1x32xf32>
    tpu.vector_store %arg6[%c0_14, %c0_15, %c0_16], %23 {strides = array<i32>} : memref<1x1x32xf32, #tpu.memory_space<vmem>>, vector<1x1x32xf32>,
    return
  }
  func.func @transform_0(%arg0: i32) -> (i32, i32) {
    %c0_i32 = arith.constant 0 : i32
    %c0_i32_0 = arith.constant 0 : i32
    return %arg0, %c0_i32 : i32, i32
  }
  func.func @transform_1(%arg0: i32) -> (i32, i32) {
    %c0_i32 = arith.constant 0 : i32
    %c0_i32_0 = arith.constant 0 : i32
    %c0_i32_1 = arith.constant 0 : i32
    return %c0_i32, %c0_i32_0 : i32, i32
  }
  func.func @transform_2(%arg0: i32) -> (i32, i32) {
    %c0_i32 = arith.constant 0 : i32
    %c0_i32_0 = arith.constant 0 : i32
    %c0_i32_1 = arith.constant 0 : i32
    return %c0_i32, %c0_i32_0 : i32, i32
  }
  func.func @transform_3(%arg0: i32) -> (i32, i32) {
    %c0_i32 = arith.constant 0 : i32
    %c0_i32_0 = arith.constant 0 : i32
    return %arg0, %c0_i32 : i32, i32
  }
  func.func @transform_4(%arg0: i32) -> (i32, i32, i32) {
    %c0_i32 = arith.constant 0 : i32
    %c0_i32_0 = arith.constant 0 : i32
    %c0_i32_1 = arith.constant 0 : i32
    return %arg0, %c0_i32, %c0_i32_0 : i32, i32, i32
  }
  func.func @transform_5(%arg0: i32) -> (i32, i32, i32) {
    %c0_i32 = arith.constant 0 : i32
    %c0_i32_0 = arith.constant 0 : i32
    %c0_i32_1 = arith.constant 0 : i32
    return %arg0, %c0_i32, %c0_i32_0 : i32, i32, i32
  }
}

module attributes {stable_mosaic.version = 11 : i64} {
  func.func @_conv_stats_kernel(%arg0: i32, %arg1: memref<32x512xbf16, #tpu.memory_space<vmem>>, %arg2: memref<512x64xbf16, #tpu.memory_space<vmem>>, %arg3: memref<1x64xf32, #tpu.memory_space<vmem>>, %arg4: memref<32x64xbf16, #tpu.memory_space<vmem>>, %arg5: memref<1x1x64xf32, #tpu.memory_space<vmem>>, %arg6: memref<1x1x64xf32, #tpu.memory_space<vmem>>) attributes {dimension_semantics = [#tpu.dimension_semantics<parallel>], iteration_bounds = array<i64: 1>, scalar_prefetch = 0 : i64, scratch_operands = 0 : i64, tpu.core_type = #tpu.core_type<tc>, window_params = [{transform_indices = @transform_0, window_bounds = array<i64: 32, 512>}, {pipeline_mode = #tpu.pipeline_mode<synchronous>, transform_indices = @transform_1, window_bounds = array<i64: 512, 64>}, {pipeline_mode = #tpu.pipeline_mode<synchronous>, transform_indices = @transform_2, window_bounds = array<i64: 1, 64>}, {transform_indices = @transform_3, window_bounds = array<i64: 32, 64>}, {transform_indices = @transform_4, window_bounds = array<i64: 1, 1, 64>}, {transform_indices = @transform_5, window_bounds = array<i64: 1, 1, 64>}]} {
    %c0 = arith.constant 0 : index
    %c0_0 = arith.constant 0 : index
    %0 = vector.load %arg1[%c0, %c0_0] : memref<32x512xbf16, #tpu.memory_space<vmem>>, vector<32x512xbf16>
    %c0_1 = arith.constant 0 : index
    %c0_2 = arith.constant 0 : index
    %1 = vector.load %arg2[%c0_1, %c0_2] : memref<512x64xbf16, #tpu.memory_space<vmem>>, vector<512x64xbf16>
    %cst = arith.constant dense<0.000000e+00> : vector<32x64xf32>
    %2 = tpu.matmul %0, %1, %cst {dimension_numbers = #tpu.dot_dimension_numbers<[1], [0], [0], [1], [0, 0, 1, 1], [], []>} : vector<32x512xbf16>, vector<512x64xbf16>, vector<32x64xf32> -> vector<32x64xf32>
    %c0_3 = arith.constant 0 : index
    %c0_4 = arith.constant 0 : index
    %3 = vector.load %arg3[%c0_3, %c0_4] : memref<1x64xf32, #tpu.memory_space<vmem>>, vector<1x64xf32>
    %4 = vector.broadcast %3 : vector<1x64xf32> to vector<32x64xf32>
    %5 = arith.addf %2, %4 : vector<32x64xf32>
    %6 = arith.truncf %5 : vector<32x64xf32> to vector<32x64xbf16>
    %c0_5 = arith.constant 0 : index
    %c0_6 = arith.constant 0 : index
    %7 = vector.load %arg4[%c0_5, %c0_6] : memref<32x64xbf16, #tpu.memory_space<vmem>>, vector<32x64xbf16>
    tpu.vector_store %arg4[%c0_5, %c0_6], %6 {strides = array<i32>} : memref<32x64xbf16, #tpu.memory_space<vmem>>, vector<32x64xbf16>,
    %8 = tpu.iota {dimensions = array<i32: 0>} : vector<32x64xi32>
    %c32_i32 = arith.constant 32 : i32
    %9 = arith.muli %arg0, %c32_i32 : i32
    %10 = vector.broadcast %9 : i32 to vector<32x64xi32>
    %11 = arith.addi %8, %10 : vector<32x64xi32>
    %c32_i32_7 = arith.constant 32 : i32
    %12 = vector.broadcast %c32_i32_7 : i32 to vector<32x64xi32>
    %13 = arith.cmpi slt, %11, %12 : vector<32x64xi32>
    %cst_8 = arith.constant 0.000000e+00 : f32
    %14 = vector.broadcast %cst_8 : f32 to vector<32x64xf32>
    %15 = arith.select %13, %5, %14 : vector<32x64xi1>, vector<32x64xf32>
    %cst_9 = arith.constant dense<0.000000e+00> : vector<64xf32>
    %16 = vector.multi_reduction <add>, %15, %cst_9 [0] : vector<32x64xf32> to vector<64xf32>
    %17 = vector.shape_cast %16 : vector<64xf32> to vector<1x64xf32>
    %18 = vector.shape_cast %17 : vector<1x64xf32> to vector<1x1x64xf32>
    %c0_10 = arith.constant 0 : index
    %c0_11 = arith.constant 0 : index
    %c0_12 = arith.constant 0 : index
    %19 = vector.load %arg5[%c0_10, %c0_11, %c0_12] : memref<1x1x64xf32, #tpu.memory_space<vmem>>, vector<1x1x64xf32>
    tpu.vector_store %arg5[%c0_10, %c0_11, %c0_12], %18 {strides = array<i32>} : memref<1x1x64xf32, #tpu.memory_space<vmem>>, vector<1x1x64xf32>,
    %20 = arith.mulf %15, %15 : vector<32x64xf32>
    %cst_13 = arith.constant dense<0.000000e+00> : vector<64xf32>
    %21 = vector.multi_reduction <add>, %20, %cst_13 [0] : vector<32x64xf32> to vector<64xf32>
    %22 = vector.shape_cast %21 : vector<64xf32> to vector<1x64xf32>
    %23 = vector.shape_cast %22 : vector<1x64xf32> to vector<1x1x64xf32>
    %c0_14 = arith.constant 0 : index
    %c0_15 = arith.constant 0 : index
    %c0_16 = arith.constant 0 : index
    %24 = vector.load %arg6[%c0_14, %c0_15, %c0_16] : memref<1x1x64xf32, #tpu.memory_space<vmem>>, vector<1x1x64xf32>
    tpu.vector_store %arg6[%c0_14, %c0_15, %c0_16], %23 {strides = array<i32>} : memref<1x1x64xf32, #tpu.memory_space<vmem>>, vector<1x1x64xf32>,
    return
  }
  func.func @transform_0(%arg0: i32) -> (i32, i32) {
    %c0_i32 = arith.constant 0 : i32
    %c0_i32_0 = arith.constant 0 : i32
    return %arg0, %c0_i32 : i32, i32
  }
  func.func @transform_1(%arg0: i32) -> (i32, i32) {
    %c0_i32 = arith.constant 0 : i32
    %c0_i32_0 = arith.constant 0 : i32
    %c0_i32_1 = arith.constant 0 : i32
    return %c0_i32, %c0_i32_0 : i32, i32
  }
  func.func @transform_2(%arg0: i32) -> (i32, i32) {
    %c0_i32 = arith.constant 0 : i32
    %c0_i32_0 = arith.constant 0 : i32
    %c0_i32_1 = arith.constant 0 : i32
    return %c0_i32, %c0_i32_0 : i32, i32
  }
  func.func @transform_3(%arg0: i32) -> (i32, i32) {
    %c0_i32 = arith.constant 0 : i32
    %c0_i32_0 = arith.constant 0 : i32
    return %arg0, %c0_i32 : i32, i32
  }
  func.func @transform_4(%arg0: i32) -> (i32, i32, i32) {
    %c0_i32 = arith.constant 0 : i32
    %c0_i32_0 = arith.constant 0 : i32
    %c0_i32_1 = arith.constant 0 : i32
    return %arg0, %c0_i32, %c0_i32_0 : i32, i32, i32
  }
  func.func @transform_5(%arg0: i32) -> (i32, i32, i32) {
    %c0_i32 = arith.constant 0 : i32
    %c0_i32_0 = arith.constant 0 : i32
    %c0_i32_1 = arith.constant 0 : i32
    return %arg0, %c0_i32, %c0_i32_0 : i32, i32, i32
  }
}

module attributes {stable_mosaic.version = 11 : i64} {
  func.func @_conv_act_kernel(%arg0: i32, %arg1: memref<50x1024xbf16, #tpu.memory_space<vmem>>, %arg2: memref<1024x128xbf16, #tpu.memory_space<vmem>>, %arg3: memref<1x128xf32, #tpu.memory_space<vmem>>, %arg4: memref<50x128xf32, #tpu.memory_space<vmem>>) attributes {dimension_semantics = [#tpu.dimension_semantics<parallel>], iteration_bounds = array<i64: 1>, scalar_prefetch = 0 : i64, scratch_operands = 0 : i64, tpu.core_type = #tpu.core_type<tc>, window_params = [{transform_indices = @transform_0, window_bounds = array<i64: 50, 1024>}, {pipeline_mode = #tpu.pipeline_mode<synchronous>, transform_indices = @transform_1, window_bounds = array<i64: 1024, 128>}, {pipeline_mode = #tpu.pipeline_mode<synchronous>, transform_indices = @transform_2, window_bounds = array<i64: 1, 128>}, {transform_indices = @transform_3, window_bounds = array<i64: 50, 128>}]} {
    %c0 = arith.constant 0 : index
    %c0_0 = arith.constant 0 : index
    %0 = vector.load %arg1[%c0, %c0_0] : memref<50x1024xbf16, #tpu.memory_space<vmem>>, vector<50x1024xbf16>
    %c0_1 = arith.constant 0 : index
    %c0_2 = arith.constant 0 : index
    %1 = vector.load %arg2[%c0_1, %c0_2] : memref<1024x128xbf16, #tpu.memory_space<vmem>>, vector<1024x128xbf16>
    %cst = arith.constant dense<0.000000e+00> : vector<50x128xf32>
    %2 = tpu.matmul %0, %1, %cst {dimension_numbers = #tpu.dot_dimension_numbers<[1], [0], [0], [1], [0, 0, 1, 1], [], []>} : vector<50x1024xbf16>, vector<1024x128xbf16>, vector<50x128xf32> -> vector<50x128xf32>
    %c0_3 = arith.constant 0 : index
    %c0_4 = arith.constant 0 : index
    %3 = vector.load %arg3[%c0_3, %c0_4] : memref<1x128xf32, #tpu.memory_space<vmem>>, vector<1x128xf32>
    %4 = vector.broadcast %3 : vector<1x128xf32> to vector<50x128xf32>
    %5 = arith.addf %2, %4 : vector<50x128xf32>
    %c0_5 = arith.constant 0 : index
    %c0_6 = arith.constant 0 : index
    %6 = vector.load %arg4[%c0_5, %c0_6] : memref<50x128xf32, #tpu.memory_space<vmem>>, vector<50x128xf32>
    tpu.vector_store %arg4[%c0_5, %c0_6], %5 {strides = array<i32>} : memref<50x128xf32, #tpu.memory_space<vmem>>, vector<50x128xf32>,
    return
  }
  func.func @transform_0(%arg0: i32) -> (i32, i32) {
    %c0_i32 = arith.constant 0 : i32
    %c0_i32_0 = arith.constant 0 : i32
    return %arg0, %c0_i32 : i32, i32
  }
  func.func @transform_1(%arg0: i32) -> (i32, i32) {
    %c0_i32 = arith.constant 0 : i32
    %c0_i32_0 = arith.constant 0 : i32
    %c0_i32_1 = arith.constant 0 : i32
    return %c0_i32, %c0_i32_0 : i32, i32
  }
  func.func @transform_2(%arg0: i32) -> (i32, i32) {
    %c0_i32 = arith.constant 0 : i32
    %c0_i32_0 = arith.constant 0 : i32
    %c0_i32_1 = arith.constant 0 : i32
    return %c0_i32, %c0_i32_0 : i32, i32
  }
  func.func @transform_3(%arg0: i32) -> (i32, i32) {
    %c0_i32 = arith.constant 0 : i32
    %c0_i32_0 = arith.constant 0 : i32
    return %arg0, %c0_i32 : i32, i32
  }
}

</mosaic_0001>

<bundles_post_ra>
// kernel: nlayer_discriminator_forward.5
= control target key start
LH: loop header
LB: loop body
LE: loop exit
PB: predicated region body
PF: predicated region fallthrough
CT: control target
= control target key end

     0   :  { %v603_v0 = vmov 0.0   ;;  %vm604_vm0 = vmmov 0   ;;  %vm120_vm1 = vcmask 392192   ;;  %vm422_vm4 = vcmask 60416   ;;  %s798_s1 = inlined_call_operand.vmem [shape: bf16[48,8], index: 1, kind: input, shape index: {}]   ;;  %s799_s0 = inlined_call_operand.vmem [shape: bf16[162,48], index: 0, kind: input, shape index: {}]   ;;  %s800_s2 = inlined_call_operand.vmem [shape: f32[1,8], index: 2, kind: input, shape index: {}]   ;;  %s801_s3 = inlined_call_operand.vmem [shape: bf16[162,8], index: 3, kind: output, shape index: {}]  }
   0x1   :  { %531 = vmatprep.subr.bf16.mxu0 %v603_v0  ;;  %v589_v1 = vld [vmem:[%s798_s1 + $0x10] sm:$0xff]   ;;  %581 = vmatprep.subr.bf16.mxu1 %v603_v0  ;;  %v590_v2 = vld [vmem:[%s798_s1 + $0x8] sm:$0xff]   ;;  %v591_v3 = vld [vmem:[%s798_s1] sm:$0xff]  }
   0x2   :  { %537 = vmatprep.mubr.msk.bf16.mxu0 %vm604_vm0, %v603_v0  ;;  %561 = vmatprep.mubr.msk.bf16.mxu1 %vm604_vm0, %v603_v0  ;;  %v592_v4 = vld [vmem:[%s799_s0] sm:$0xff]   ;;  %v593_v5 = vld [vmem:[%s799_s0 + $0x30] sm:$0xff]   ;;  %v594_v6 = vld [vmem:[%s799_s0 + $0x8] sm:$0xff]  }
   0x3   :  { %532 = vmatpush3.bf16.msra.mxu0 %v589_v1  ;;  %584 = vmatpush3.bf16.msra.mxu1 %v589_v1  ;;  %v595_v7 = vld [vmem:[%s799_s0 + $0x38] sm:$0xff]   ;;  %v596_v8 = vld [vmem:[%s799_s0 + $0x10] sm:$0xff]   ;;  %v597_v9 = vld [vmem:[%s799_s0 + $0x40] sm:$0xff]  }
   0x4   :  { %533 = vmatprep.subr.bf16.mxu0 %v603_v0  ;;  %582 = vmatprep.subr.bf16.mxu1 %v603_v0  ;;  %v598_v10 = vld [vmem:[%s799_s0 + $0x18] sm:$0xff]   ;;  %v599_v11 = vld [vmem:[%s799_s0 + $0x48] sm:$0xff]   ;;  %v600_v12 = vld [vmem:[%s799_s0 + $0x20] sm:$0xff]  }
   0x5   :  { %v601_v13 = vld [vmem:[%s799_s0 + $0x50] ss:$0 sps:$4 sm:$0x11]   ;;  %v602_v14 = vld [vmem:[%s799_s0 + $0x28] sm:$0xff]   ;;  %v692_v15 = vld [vmem:[%s800_s2] ss:$0 sm:$0xff] }
   0x7   :  { %534 = vmatpush3.bf16.msra.mxu0 %v590_v2  ;;  %585 = vmatpush3.bf16.msra.mxu1 %v590_v2 }
   0x8   :  { %535 = vmatprep.subr.bf16.mxu0 %v603_v0  ;;  %583 = vmatprep.subr.bf16.mxu1 %v603_v0 }
   0xb   :  { %536 = vmatpush3.bf16.msra.mxu0 %v591_v3  ;;  %586 = vmatpush3.bf16.msra.mxu1 %v591_v3 }
   0xe   :  { %538 = vmatmul.mubr.msk.bf16.vlgmr.msra.gmra.mxu0 %vm120_vm1, %v592_v4  ;;  %562 = vmatmul.mubr.msk.bf16.vlgmr.msra.gmra.mxu1 %vm120_vm1, %v593_v5 }
   0xf   :  { %541 = vmatprep.mubr.msk.bf16.mxu0 %vm604_vm0, %v603_v0  ;;  %565 = vmatprep.mubr.msk.bf16.mxu1 %vm604_vm0, %v603_v0 }
  0x16   :  { %542 = vmatmul.mubr.msk.bf16.gmra.mxu0 %vm120_vm1, %v594_v6  ;;  %566 = vmatmul.mubr.msk.bf16.gmra.mxu1 %vm120_vm1, %v595_v7 }
  0x17   :  { %545 = vmatprep.mubr.msk.bf16.mxu0 %vm604_vm0, %v603_v0  ;;  %569 = vmatprep.mubr.msk.bf16.mxu1 %vm604_vm0, %v603_v0 }
  0x1e   :  { %546 = vmatmul.mubr.msk.bf16.gmra.mxu0 %vm120_vm1, %v596_v8  ;;  %570 = vmatmul.mubr.msk.bf16.gmra.mxu1 %vm120_vm1, %v597_v9 }
  0x1f   :  { %549 = vmatprep.mubr.msk.bf16.mxu0 %vm604_vm0, %v603_v0  ;;  %573 = vmatprep.mubr.msk.bf16.mxu1 %vm604_vm0, %v603_v0 }
  0x26   :  { %550 = vmatmul.mubr.msk.bf16.gmra.mxu0 %vm120_vm1, %v598_v10  ;;  %574 = vmatmul.mubr.msk.bf16.gmra.mxu1 %vm120_vm1, %v599_v11 }
  0x27   :  { %553 = vmatprep.mubr.msk.bf16.mxu0 %vm604_vm0, %v603_v0  ;;  %577 = vmatprep.mubr.msk.bf16.mxu1 %vm604_vm0, %v603_v0 }
  0x2e   :  { %554 = vmatmul.mubr.msk.bf16.gmra.mxu0 %vm120_vm1, %v600_v12  ;;  %578 = vmatmul.mubr.msk.bf16.gmra.mxu1 %vm120_vm1, %v601_v13 }
  0x2f   :  { %557 = vmatprep.mubr.msk.bf16.mxu0 %vm604_vm0, %v603_v0 }
  0x36   :  { %558 = vmatmul.mubr.msk.bf16.gmra.mxu0 %vm120_vm1, %v602_v14 }
  0xce   :  { %v188_v16 = vpop.f32.mrf.mxu0  ;;  %v236_v17 = vpop.f32.mrf.mxu1 }
  0xcf   :  { %v189_v18 = vadd.f32 %v692_v15, %v188_v16  ;;  %v237_v19 = vadd.f32 %v692_v15, %v236_v17 }
  0xd0   :  { %v539_v20 = vpop.f32.mrf.mxu0  ;;  %v563_v21 = vpop.f32.mrf.mxu1 }
  0xd1   :  { %vm274_vm2 = vcmp.ge.f32.partialorder %v189_v18, 0.0  ;;  %v295_v22 = vmul.f32 0.2, %v189_v18  ;;  %vm286_vm3 = vcmp.ge.f32.partialorder %v237_v19, 0.0  ;;  %v307_v23 = vmul.f32 0.2, %v237_v19 }
  0xd2   :  { %v191_v24 = vpop.f32.mrf.mxu0  ;;  %v239_v25 = vpop.f32.mrf.mxu1 }
  0xd3   :  { %v316_v26 = vsel %vm274_vm2, %v189_v18, %v295_v22  ;;  %v192_v27 = vadd.f32 %v692_v15, %v191_v24  ;;  %v328_v28 = vsel %vm286_vm3, %v237_v19, %v307_v23  ;;  %v240_v29 = vadd.f32 %v692_v15, %v239_v25 }
  0xd4   :  { %v496_v30 = vpack.c.bf16 %v316_v26, %v316_v26  ;;  %v540_v31 = vpop.f32.mrf.mxu0  ;;  %v508_v32 = vpack.c.bf16 %v328_v28, %v328_v28  ;;  %v564_v33 = vpop.f32.mrf.mxu1 }
  0xd5   :  { %vm275_vm5 = vcmp.ge.f32.partialorder %v192_v27, 0.0  ;;  %v296_v34 = vmul.f32 0.2, %v192_v27  ;;  %vm287_vm6 = vcmp.ge.f32.partialorder %v240_v29, 0.0  ;;  %v308_v35 = vmul.f32 0.2, %v240_v29 }
  0xd6   :  { %423 = vst.msk [vmem:[%s801_s3] sm:$0xf] %vm422_vm4, %v496_v30  ;;  %435 = vst.msk [vmem:[%s801_s3 + $0x30] sm:$0xf] %vm422_vm4, %v508_v32  ;;  %v196_v36 = vpop.f32.mrf.mxu0  ;;  %v244_v37 = vpop.f32.mrf.mxu1 }
  0xd7   :  { %v317_v38 = vsel %vm275_vm5, %v192_v27, %v296_v34  ;;  %v197_v39 = vadd.f32 %v692_v15, %v196_v36  ;;  %v329_v40 = vsel %vm287_vm6, %v240_v29, %v308_v35  ;;  %v245_v41 = vadd.f32 %v692_v15, %v244_v37 }
  0xd8   :  { %v497_v42 = vpack.c.bf16 %v317_v38, %v317_v38  ;;  %v543_v43 = vpop.f32.mrf.mxu0  ;;  %v509_v44 = vpack.c.bf16 %v329_v40, %v329_v40  ;;  %v567_v45 = vpop.f32.mrf.mxu1  ;;  %vm443_vm6 = vcmask 57344  }
  0xd9   :  { %vm276_vm7 = vcmp.ge.f32.partialorder %v197_v39, 0.0  ;;  %v297_v46 = vmul.f32 0.2, %v197_v39  ;;  %vm288_vm8 = vcmp.ge.f32.partialorder %v245_v41, 0.0  ;;  %v309_v47 = vmul.f32 0.2, %v245_v41 }
  0xda   :  { %424 = vst.msk [vmem:[%s801_s3 + $0x4] sm:$0xf] %vm422_vm4, %v497_v42  ;;  %436 = vst.msk [vmem:[%s801_s3 + $0x34] sm:$0xf] %vm422_vm4, %v509_v44  ;;  %v199_v48 = vpop.f32.mrf.mxu0  ;;  %v247_v49 = vpop.f32.mrf.mxu1 }
  0xdb   :  { %v318_v50 = vsel %vm276_vm7, %v197_v39, %v297_v46  ;;  %v200_v51 = vadd.f32 %v692_v15, %v199_v48  ;;  %v330_v52 = vsel %vm288_vm8, %v245_v41, %v309_v47  ;;  %v248_v53 = vadd.f32 %v692_v15, %v247_v49 }
  0xdc   :  { %v498_v54 = vpack.c.bf16 %v318_v50, %v318_v50  ;;  %v544_v55 = vpop.f32.mrf.mxu0  ;;  %v510_v56 = vpack.c.bf16 %v330_v52, %v330_v52  ;;  %v568_v57 = vpop.f32.mrf.mxu1 }
  0xdd   :  { %vm277_vm9 = vcmp.ge.f32.partialorder %v200_v51, 0.0  ;;  %v298_v58 = vmul.f32 0.2, %v200_v51  ;;  %vm289_vm10 = vcmp.ge.f32.partialorder %v248_v53, 0.0  ;;  %v310_v59 = vmul.f32 0.2, %v248_v53 }
  0xde   :  { %425 = vst.msk [vmem:[%s801_s3 + $0x8] sm:$0xf] %vm422_vm4, %v498_v54  ;;  %437 = vst.msk [vmem:[%s801_s3 + $0x38] sm:$0xf] %vm422_vm4, %v510_v56  ;;  %v204_v60 = vpop.f32.mrf.mxu0  ;;  %v252_v61 = vpop.f32.mrf.mxu1 }
  0xdf   :  { %v319_v62 = vsel %vm277_vm9, %v200_v51, %v298_v58  ;;  %v205_v63 = vadd.f32 %v692_v15, %v204_v60  ;;  %v331_v0 = vsel %vm289_vm10, %v248_v53, %v310_v59  ;;  %v253_v1 = vadd.f32 %v692_v15, %v252_v61 }
  0xe0   :  { %v499_v2 = vpack.c.bf16 %v319_v62, %v319_v62  ;;  %v547_v3 = vpop.f32.mrf.mxu0  ;;  %v511_v4 = vpack.c.bf16 %v331_v0, %v331_v0  ;;  %v571_v5 = vpop.f32.mrf.mxu1 }
  0xe1   :  { %vm278_vm11 = vcmp.ge.f32.partialorder %v205_v63, 0.0  ;;  %v299_v6 = vmul.f32 0.2, %v205_v63  ;;  %vm290_vm12 = vcmp.ge.f32.partialorder %v253_v1, 0.0  ;;  %v311_v7 = vmul.f32 0.2, %v253_v1 }
  0xe2   :  { %426 = vst.msk [vmem:[%s801_s3 + $0xc] sm:$0xf] %vm422_vm4, %v499_v2  ;;  %438 = vst.msk [vmem:[%s801_s3 + $0x3c] sm:$0xf] %vm422_vm4, %v511_v4  ;;  %v207_v8 = vpop.f32.mrf.mxu0  ;;  %v255_v9 = vpop.f32.mrf.mxu1 }
  0xe3   :  { %v320_v10 = vsel %vm278_vm11, %v205_v63, %v299_v6  ;;  %v208_v11 = vadd.f32 %v692_v15, %v207_v8  ;;  %v332_v12 = vsel %vm290_vm12, %v253_v1, %v311_v7  ;;  %v256_v13 = vadd.f32 %v692_v15, %v255_v9 }
  0xe4   :  { %v500_v14 = vpack.c.bf16 %v320_v10, %v320_v10  ;;  %v548_v16 = vpop.f32.mrf.mxu0  ;;  %v512_v17 = vpack.c.bf16 %v332_v12, %v332_v12  ;;  %v572_v18 = vpop.f32.mrf.mxu1 }
  0xe5   :  { %vm279_vm13 = vcmp.ge.f32.partialorder %v208_v11, 0.0  ;;  %v300_v19 = vmul.f32 0.2, %v208_v11  ;;  %vm291_vm14 = vcmp.ge.f32.partialorder %v256_v13, 0.0  ;;  %v312_v20 = vmul.f32 0.2, %v256_v13 }
  0xe6   :  { %427 = vst.msk [vmem:[%s801_s3 + $0x10] sm:$0xf] %vm422_vm4, %v500_v14  ;;  %439 = vst.msk [vmem:[%s801_s3 + $0x40] sm:$0xf] %vm422_vm4, %v512_v17  ;;  %v212_v21 = vpop.f32.mrf.mxu0  ;;  %v260_v22 = vpop.f32.mrf.mxu1 }
  0xe7   :  { %v321_v23 = vsel %vm279_vm13, %v208_v11, %v300_v19  ;;  %v213_v24 = vadd.f32 %v692_v15, %v212_v21  ;;  %v333_v25 = vsel %vm291_vm14, %v256_v13, %v312_v20  ;;  %v261_v26 = vadd.f32 %v692_v15, %v260_v22 }
  0xe8   :  { %v501_v27 = vpack.c.bf16 %v321_v23, %v321_v23  ;;  %v551_v28 = vpop.f32.mrf.mxu0  ;;  %v513_v29 = vpack.c.bf16 %v333_v25, %v333_v25  ;;  %v575_v30 = vpop.f32.mrf.mxu1 }
  0xe9   :  { %vm280_vm15 = vcmp.ge.f32.partialorder %v213_v24, 0.0  ;;  %v301_v31 = vmul.f32 0.2, %v213_v24  ;;  %vm292_vm0 = vcmp.ge.f32.partialorder %v261_v26, 0.0  ;;  %v313_v32 = vmul.f32 0.2, %v261_v26 }
  0xea   :  { %428 = vst.msk [vmem:[%s801_s3 + $0x14] sm:$0xf] %vm422_vm4, %v501_v27  ;;  %440 = vst.msk [vmem:[%s801_s3 + $0x44] sm:$0xf] %vm422_vm4, %v513_v29  ;;  %v215_v33 = vpop.f32.mrf.mxu0  ;;  %v263_v34 = vpop.f32.mrf.mxu1 }
  0xeb   :  { %v322_v35 = vsel %vm280_vm15, %v213_v24, %v301_v31  ;;  %v216_v36 = vadd.f32 %v692_v15, %v215_v33  ;;  %v334_v37 = vsel %vm292_vm0, %v261_v26, %v313_v32  ;;  %v264_v38 = vadd.f32 %v692_v15, %v263_v34 }
  0xec   :  { %v502_v39 = vpack.c.bf16 %v322_v35, %v322_v35  ;;  %v552_v40 = vpop.f32.mrf.mxu0  ;;  %v514_v41 = vpack.c.bf16 %v334_v37, %v334_v37  ;;  %v576_v42 = vpop.f32.mrf.mxu1 }
  0xed   :  { %vm281_vm1 = vcmp.ge.f32.partialorder %v216_v36, 0.0  ;;  %v302_v43 = vmul.f32 0.2, %v216_v36  ;;  %vm293_vm2 = vcmp.ge.f32.partialorder %v264_v38, 0.0  ;;  %v314_v44 = vmul.f32 0.2, %v264_v38 }
  0xee   :  { %429 = vst.msk [vmem:[%s801_s3 + $0x18] sm:$0xf] %vm422_vm4, %v502_v39  ;;  %441 = vst.msk [vmem:[%s801_s3 + $0x48] sm:$0xf] %vm422_vm4, %v514_v41  ;;  %v220_v45 = vpop.f32.mrf.mxu0  ;;  %v268_v46 = vpop.f32.mrf.mxu1 }
  0xef   :  { %v323_v47 = vsel %vm281_vm1, %v216_v36, %v302_v43  ;;  %v221_v48 = vadd.f32 %v692_v15, %v220_v45  ;;  %v335_v49 = vsel %vm293_vm2, %v264_v38, %v314_v44  ;;  %v269_v50 = vadd.f32 %v692_v15, %v268_v46 }
  0xf0   :  { %v503_v51 = vpack.c.bf16 %v323_v47, %v323_v47  ;;  %v555_v52 = vpop.f32.mrf.mxu0  ;;  %v515_v53 = vpack.c.bf16 %v335_v49, %v335_v49  ;;  %v579_v54 = vpop.f32.mrf.mxu1 }
  0xf1   :  { %vm282_vm3 = vcmp.ge.f32.partialorder %v221_v48, 0.0  ;;  %v303_v55 = vmul.f32 0.2, %v221_v48  ;;  %vm294_vm5 = vcmp.ge.f32.partialorder %v269_v50, 0.0  ;;  %v315_v56 = vmul.f32 0.2, %v269_v50 }
  0xf2   :  { %430 = vst.msk [vmem:[%s801_s3 + $0x1c] sm:$0xf] %vm422_vm4, %v503_v51  ;;  %442 = vst.msk [vmem:[%s801_s3 + $0x4c] sm:$0xf] %vm422_vm4, %v515_v53  ;;  %v223_v57 = vpop.f32.mrf.mxu0  ;;  %v271_v58 = vpop.f32.mrf.mxu1 }
  0xf3   :  { %v324_v59 = vsel %vm282_vm3, %v221_v48, %v303_v55  ;;  %v224_v60 = vadd.f32 %v692_v15, %v223_v57  ;;  %v336_v61 = vsel %vm294_vm5, %v269_v50, %v315_v56 }
  0xf4   :  { %v504_v62 = vpack.c.bf16 %v324_v59, %v324_v59  ;;  %v556_v63 = vpop.f32.mrf.mxu0  ;;  %v516_v0 = vpack.c.bf16 %v336_v61, %v336_v61  ;;  %v580_v1 = vpop.f32.mrf.mxu1 }
  0xf5   :  { %vm283_vm7 = vcmp.ge.f32.partialorder %v224_v60, 0.0  ;;  %v304_v2 = vmul.f32 0.2, %v224_v60 }
  0xf6   :  { %431 = vst.msk [vmem:[%s801_s3 + $0x20] sm:$0xf] %vm422_vm4, %v504_v62  ;;  %v228_v3 = vpop.f32.mrf.mxu0 }
  0xf7   :  { %444 = vst.msk [vmem:[%s801_s3 + $0x50] sm:$0x1] %vm443_vm6, %v516_v0  ;;  %v325_v4 = vsel %vm283_vm7, %v224_v60, %v304_v2  ;;  %v229_v5 = vadd.f32 %v692_v15, %v228_v3 }
  0xf8   :  { %v505_v6 = vpack.c.bf16 %v325_v4, %v325_v4  ;;  %v559_v7 = vpop.f32.mrf.mxu0 }
  0xf9   :  { %vm284_vm8 = vcmp.ge.f32.partialorder %v229_v5, 0.0  ;;  %v305_v8 = vmul.f32 0.2, %v229_v5 }
  0xfa   :  { %432 = vst.msk [vmem:[%s801_s3 + $0x24] sm:$0xf] %vm422_vm4, %v505_v6  ;;  %v231_v9 = vpop.f32.mrf.mxu0 }
  0xfb   :  { %v326_v10 = vsel %vm284_vm8, %v229_v5, %v305_v8  ;;  %v232_v11 = vadd.f32 %v692_v15, %v231_v9 }
  0xfc   :  { %v506_v12 = vpack.c.bf16 %v326_v10, %v326_v10  ;;  %v560_v13 = vpop.f32.mrf.mxu0 }
  0xfd   :  { %vm285_vm9 = vcmp.ge.f32.partialorder %v232_v11, 0.0  ;;  %v306_v14 = vmul.f32 0.2, %v232_v11 }
  0xfe   :  { %433 = vst.msk [vmem:[%s801_s3 + $0x28] sm:$0xf] %vm422_vm4, %v506_v12 }
  0xff   :  { %v327_v16 = vsel %vm285_vm9, %v232_v11, %v306_v14 }
 0x100   :  { %v507_v17 = vpack.c.bf16 %v327_v16, %v327_v16 }
 0x102   :  { %434 = vst.msk [vmem:[%s801_s3 + $0x2c] sm:$0xf] %vm422_vm4, %v507_v17 }

// kernel: nlayer_discriminator_forward.6
= control target key start
LH: loop header
LB: loop body
LE: loop exit
PB: predicated region body
PF: predicated region fallthrough
CT: control target
= control target key end

     0   :  { %v220_v13 = vlaneseq  ;;  %vm211_vm0 = vcmask 125952   ;;  %vm218_vm1 = vcmask 122880   ;;  %vm251_vm2 = vcmask 130048   ;;  %s520_s1 = inlined_call_operand.vmem [shape: bf16[128,16], index: 1, kind: input, shape index: {}]   ;;  %s521_s0 = inlined_call_operand.vmem [shape: bf16[50,128], index: 0, kind: input, shape index: {}]   ;;  %s522_s2 = inlined_call_operand.vmem [shape: f32[1,16], index: 2, kind: input, shape index: {}]   ;;  %s523_s3 = inlined_call_operand.vmem [shape: bf16[50,16], index: 3, kind: output, shape index: {0}]   ;;  %s524_s4 = inlined_call_operand.vmem [shape: f32[1,1,16], index: 4, kind: output, shape index: {1}]   ;;  %s525_s5 = inlined_call_operand.vmem [shape: f32[1,1,16], index: 5, kind: output, shape index: {2}]  }
   0x1   :  { %v391_v0 = vld [vmem:[%s520_s1 + $0x38] sm:$0xff]   ;;  %v392_v1 = vld [vmem:[%s520_s1 + $0x30] sm:$0xff]   ;;  %v393_v2 = vld [vmem:[%s520_s1 + $0x28] sm:$0xff]   ;;  %vm263_vm4 = vcmask 123904  }
   0x2   :  { %351 = vmatprep.subr.bf16.mxu0 %v391_v0  ;;  %375 = vmatprep.subr.bf16.mxu1 %v391_v0  ;;  %v394_v3 = vld [vmem:[%s520_s1 + $0x20] sm:$0xff]   ;;  %v401_v5 = vld [vmem:[%s521_s0 + $0x10] sm:$0xff]   ;;  %v395_v6 = vld [vmem:[%s520_s1 + $0x18] sm:$0xff]   ;;  %v221_v19 = vshrl.u32 %v220_v13, 7 }
   0x3   :  { %352 = vmatpush3.bf16.msra.mxu0 %v391_v0  ;;  %383 = vmatpush3.bf16.msra.mxu1 %v391_v0  ;;  %v399_v4 = vld [vmem:[%s521_s0] sm:$0xff]   ;;  %v396_v7 = vld [vmem:[%s520_s1 + $0x10] sm:$0xff]   ;;  %v397_v8 = vld [vmem:[%s520_s1 + $0x8] sm:$0xff]  }
   0x4   :  { %353 = vmatprep.subr.bf16.mxu0 %v392_v1  ;;  %376 = vmatprep.subr.bf16.mxu1 %v392_v1  ;;  %v398_v9 = vld [vmem:[%s520_s1] sm:$0xff]   ;;  %v400_v10 = vld [vmem:[%s521_s0 + $0x8] sm:$0xff]   ;;  %v402_v11 = vld [vmem:[%s521_s0 + $0x18] ss:$0 sps:$4 sm:$0x11]   ;;  %v227_v28 = vadd.s32 48, %v221_v19 }
   0x5   :  { %367 = vmatprep.mubr.bf16.mxu0 %v399_v4  ;;  %371 = vmatprep.mubr.bf16.mxu1 %v401_v5  ;;  %v312_v12 = vld [vmem:[%s522_s2] ss:$0 sm:$0xff] }
   0x6   :  { %vm243_vm3 = vcmp.lt.s32.totalorder %v227_v28, 50 }
   0x7   :  { %354 = vmatpush3.bf16.msra.mxu0 %v392_v1  ;;  %384 = vmatpush3.bf16.msra.mxu1 %v392_v1 }
   0x8   :  { %355 = vmatprep.subr.bf16.mxu0 %v393_v2  ;;  %377 = vmatprep.subr.bf16.mxu1 %v393_v2 }
   0xb   :  { %356 = vmatpush3.bf16.msra.mxu0 %v393_v2  ;;  %385 = vmatpush3.bf16.msra.mxu1 %v393_v2 }
   0xc   :  { %357 = vmatprep.subr.bf16.mxu0 %v394_v3  ;;  %378 = vmatprep.subr.bf16.mxu1 %v394_v3 }
   0xf   :  { %358 = vmatpush3.bf16.msra.mxu0 %v394_v3  ;;  %386 = vmatpush3.bf16.msra.mxu1 %v394_v3 }
  0x10   :  { %359 = vmatprep.subr.bf16.mxu0 %v395_v6  ;;  %379 = vmatprep.subr.bf16.mxu1 %v395_v6 }
  0x13   :  { %360 = vmatpush3.bf16.msra.mxu0 %v395_v6  ;;  %387 = vmatpush3.bf16.msra.mxu1 %v395_v6 }
  0x14   :  { %361 = vmatprep.subr.bf16.mxu0 %v396_v7  ;;  %380 = vmatprep.subr.bf16.mxu1 %v396_v7 }
  0x17   :  { %362 = vmatpush3.bf16.msra.mxu0 %v396_v7  ;;  %388 = vmatpush3.bf16.msra.mxu1 %v396_v7 }
  0x18   :  { %363 = vmatprep.subr.bf16.mxu0 %v397_v8  ;;  %381 = vmatprep.subr.bf16.mxu1 %v397_v8 }
  0x1b   :  { %364 = vmatpush3.bf16.msra.mxu0 %v397_v8  ;;  %389 = vmatpush3.bf16.msra.mxu1 %v397_v8 }
  0x1c   :  { %365 = vmatprep.subr.bf16.mxu0 %v398_v9  ;;  %382 = vmatprep.subr.bf16.mxu1 %v398_v9 }
  0x1f   :  { %366 = vmatpush3.bf16.msra.mxu0 %v398_v9  ;;  %390 = vmatpush3.bf16.msra.mxu1 %v398_v9 }
  0x22   :  { %368 = vmatmul.mubr.bf16.vlgmr.msra.gmra.mxu0 %v400_v10  ;;  %372 = vmatmul.mubr.bf16.vlgmr.msra.gmra.mxu1 %v402_v11 }
  0xe2   :  { %v369_v14 = vpop.f32.mrf.mxu0  ;;  %v373_v15 = vpop.f32.mrf.mxu1 }
  0xe3   :  { %v161_v16 = vadd.f32 %v369_v14, %v312_v12  ;;  %v177_v17 = vadd.f32 %v373_v15, %v312_v12 }
  0xe4   :  { %v152_v18 = vpop.f32.mrf.mxu0  ;;  %v168_v20 = vpop.f32.mrf.mxu1 }
  0xe5   :  { %v334_v21 = vpack.c.bf16 %v161_v16, %v161_v16  ;;  %v153_v22 = vadd.f32 %v312_v12, %v152_v18  ;;  %v338_v23 = vpack.c.bf16 %v177_v17, %v177_v17  ;;  %v169_v25 = vadd.f32 %v312_v12, %v168_v20 }
  0xe6   :  { %v370_v24 = vpop.f32.mrf.mxu0  ;;  %v374_v26 = vpop.f32.mrf.mxu1  ;;  %v275_v35 = vmul.f32 %v161_v16, %v161_v16  ;;  %v255_v43 = vsel %vm251_vm2, %v161_v16, 0.0  ;;  %v250_v53 = vsel %vm243_vm3, %v177_v17, 0.0 }
  0xe7   :  { %214 = vst.msk [vmem:[%s523_s3 + $0x8] sm:$0xf] %vm211_vm0, %v334_v21  ;;  %v332_v27 = vpack.c.bf16 %v153_v22, %v153_v22  ;;  %v164_v29 = vadd.f32 %v370_v24, %v312_v12  ;;  %v336_v30 = vpack.c.bf16 %v169_v25, %v169_v25  ;;  %v273_v32 = vmul.f32 %v153_v22, %v153_v22 }
  0xe8   :  { %219 = vst.msk [vmem:[%s523_s3 + $0x18] sm:$0x1] %vm218_vm1, %v338_v23  ;;  %v155_v31 = vpop.f32.mrf.mxu0  ;;  %v171_v34 = vpop.f32.mrf.mxu1  ;;  %v252_v37 = vsel %vm251_vm2, %v153_v22, 0.0  ;;  %v283_v50 = vsel %vm251_vm2, %v275_v35, 0.0  ;;  %v277_v52 = vmul.f32 %v169_v25, %v169_v25  ;;  %v259_v57 = vsel %vm251_vm2, %v169_v25, 0.0 }
  0xe9   :  { %212 = vst.msk [vmem:[%s523_s3] sm:$0xf] %vm211_vm0, %v332_v27  ;;  %v156_v33 = vadd.f32 %v312_v12, %v155_v31  ;;  %v335_v36 = vpack.c.bf16 %v164_v29, %v164_v29  ;;  %216 = vst.msk [vmem:[%s523_s3 + $0x10] sm:$0xf] %vm211_vm0, %v336_v30  ;;  %v172_v42 = vadd.f32 %v312_v12, %v171_v34  ;;  %v280_v44 = vsel %vm251_vm2, %v273_v32, 0.0 }
  0xea   :  { %v276_v45 = vmul.f32 %v164_v29, %v164_v29  ;;  %v257_v51 = vsel %vm251_vm2, %v164_v29, 0.0  ;;  %v279_v61 = vmul.f32 %v250_v53, %v250_v53  ;;  %v287_v62 = vsel %vm251_vm2, %v277_v52, 0.0 }
  0xeb   :  { %v333_v38 = vpack.c.bf16 %v156_v33, %v156_v33  ;;  %v253_v39 = vsel %vm251_vm2, %v156_v33, 0.0  ;;  %v274_v40 = vmul.f32 %v156_v33, %v156_v33  ;;  %215 = vst.msk [vmem:[%s523_s3 + $0xc] sm:$0xf] %vm211_vm0, %v335_v36  ;;  %v337_v49 = vpack.c.bf16 %v172_v42, %v172_v42 }
  0xec   :  { %v254_v41 = vadd.f32 %v253_v39, %v252_v37  ;;  %v285_v56 = vsel %vm251_vm2, %v276_v45, 0.0  ;;  %v278_v58 = vmul.f32 %v172_v42, %v172_v42  ;;  %v261_v63 = vsel %vm251_vm2, %v172_v42, 0.0 }
  0xed   :  { %213 = vst.msk [vmem:[%s523_s3 + $0x4] sm:$0xf] %vm211_vm0, %v333_v38  ;;  %v281_v46 = vsel %vm251_vm2, %v274_v40, 0.0  ;;  %217 = vst.msk [vmem:[%s523_s3 + $0x14] sm:$0xf] %vm211_vm0, %v337_v49  ;;  %v264_v2 = vsel %vm263_vm4, %v250_v53, 0.0 }
  0xee   :  { %v256_v47 = vadd.f32 %v255_v43, %v254_v41  ;;  %v282_v48 = vadd.f32 %v281_v46, %v280_v44  ;;  %v289_v3 = vsel %vm251_vm2, %v278_v58, 0.0  ;;  %v291_v6 = vsel %vm263_vm4, %v279_v61, 0.0 }
  0xf0   :  { %v284_v54 = vadd.f32 %v283_v50, %v282_v48  ;;  %v258_v55 = vadd.f32 %v257_v51, %v256_v47 }
  0xf2   :  { %v260_v59 = vadd.f32 %v259_v57, %v258_v55  ;;  %v286_v60 = vadd.f32 %v285_v56, %v284_v54 }
  0xf4   :  { %v262_v0 = vadd.f32 %v261_v63, %v260_v59  ;;  %v288_v1 = vadd.f32 %v287_v62, %v286_v60 }
  0xf6   :  { %v265_v4 = vadd.f32 %v264_v2, %v262_v0  ;;  %v290_v5 = vadd.f32 %v289_v3, %v288_v1 }
  0xf8   :  { %v266_v7 = vrot.slane %v265_v4, 4  ;;  %v292_v8 = vadd.f32 %v291_v6, %v290_v5 }
  0xfa   :  { %v267_v9 = vadd.f32 %v266_v7, %v265_v4  ;;  %v293_v10 = vrot.slane %v292_v8, 4 }
  0xfc   :  { %v268_v11 = vrot.slane %v267_v9, 2  ;;  %v294_v12 = vadd.f32 %v293_v10, %v292_v8 }
  0xfe   :  { %v269_v13 = vadd.f32 %v268_v11, %v267_v9  ;;  %v295_v14 = vrot.slane %v294_v12, 2 }
 0x100   :  { %v270_v15 = vrot.slane %v269_v13, 1  ;;  %v296_v16 = vadd.f32 %v295_v14, %v294_v12 }
 0x102   :  { %v271_v17 = vadd.f32 %v270_v15, %v269_v13  ;;  %v297_v18 = vrot.slane %v296_v16, 1 }
 0x104   :  { %272 = vst.msk [vmem:[%s524_s4] sm:$0x1] %vm218_vm1, %v271_v17  ;;  %v298_v19 = vadd.f32 %v297_v18, %v296_v16 }
 0x106   :  { %299 = vst.msk [vmem:[%s525_s5] sm:$0x1] %vm218_vm1, %v298_v19 }

// kernel: nlayer_discriminator_forward.7
= control target key start
LH: loop header
LB: loop body
LE: loop exit
PB: predicated region body
PF: predicated region fallthrough
CT: control target
= control target key end

     0   :  { %v239_v21 = vlaneseq  ;;  %vm234_vm0 = vcmask 257024   ;;  %vm237_vm1 = vcmask 253952   ;;  %vm254_vm3 = vcmask 261120   ;;  %s501_s1 = inlined_call_operand.vmem [shape: bf16[256,32], index: 1, kind: input, shape index: {}]   ;;  %s502_s0 = inlined_call_operand.vmem [shape: bf16[18,256], index: 0, kind: input, shape index: {}]   ;;  %s503_s2 = inlined_call_operand.vmem [shape: f32[1,32], index: 2, kind: input, shape index: {}]   ;;  %s504_s3 = inlined_call_operand.vmem [shape: bf16[18,32], index: 3, kind: output, shape index: {0}]   ;;  %s505_s4 = inlined_call_operand.vmem [shape: f32[1,1,32], index: 4, kind: output, shape index: {1}]   ;;  %s506_s5 = inlined_call_operand.vmem [shape: f32[1,1,32], index: 5, kind: output, shape index: {2}]  }
   0x1   :  { %v366_v0 = vld [vmem:[%s501_s1 + $0x78] sm:$0xff]   ;;  %v368_v2 = vld [vmem:[%s501_s1 + $0x70] sm:$0xff]   ;;  %v370_v4 = vld [vmem:[%s501_s1 + $0x68] sm:$0xff]   ;;  %vm258_vm4 = vcmask 254976  }
   0x2   :  { %v367_v1 = vld [vmem:[%s501_s1 + $0x38] sm:$0xff]   ;;  %322 = vmatprep.subr.bf16.mxu0 %v366_v0  ;;  %350 = vmatprep.subr.bf16.mxu1 %v366_v0  ;;  %v369_v3 = vld [vmem:[%s501_s1 + $0x30] sm:$0xff]   ;;  %v371_v5 = vld [vmem:[%s501_s1 + $0x28] sm:$0xff]   ;;  %v240_v22 = vshrl.u32 %v239_v21, 7 }
   0x3   :  { %323 = vmatpush3.bf16.msra.mxu0 %v367_v1  ;;  %358 = vmatpush3.bf16.msra.mxu1 %v367_v1  ;;  %v372_v6 = vld [vmem:[%s501_s1 + $0x60] sm:$0xff]   ;;  %v374_v8 = vld [vmem:[%s501_s1 + $0x58] sm:$0xff]   ;;  %v376_v10 = vld [vmem:[%s501_s1 + $0x50] sm:$0xff]  }
   0x4   :  { %324 = vmatprep.subr.bf16.mxu0 %v368_v2  ;;  %351 = vmatprep.subr.bf16.mxu1 %v368_v2  ;;  %v373_v7 = vld [vmem:[%s501_s1 + $0x20] sm:$0xff]   ;;  %v375_v9 = vld [vmem:[%s501_s1 + $0x18] sm:$0xff]   ;;  %v20_v12 = vld [vmem:[%s502_s0 + $0x10] sm:$0x11]  ;;  %v242_v28 = vadd.s32 16, %v240_v22 }
   0x5   :  { %v384_v11 = vld [vmem:[%s502_s0 + $0x4] ss:$8 sps:$4 sm:$0xff]   ;;  %v299_v13 = vcombine.high %v20_v12, %v20_v12  ;;  %v377_v14 = vld [vmem:[%s501_s1 + $0x10] sm:$0xff]   ;;  %v382_v19 = vld [vmem:[%s502_s0] ss:$8 sps:$4 sm:$0xff]   ;;  %v298_v20 = vcombine.low %v20_v12, %v20_v12 }
   0x6   :  { %v378_v15 = vld [vmem:[%s501_s1 + $0x48] sm:$0xff]   ;;  %205 = vmatprep.mubr.bf16.mxu0 %v384_v11  ;;  %v380_v17 = vld [vmem:[%s501_s1 + $0x40] sm:$0xff]   ;;  %vm250_vm2 = vcmp.lt.s32.totalorder %v242_v28, 18 }
   0x7   :  { %325 = vmatpush3.bf16.msra.mxu0 %v369_v3  ;;  %359 = vmatpush3.bf16.msra.mxu1 %v369_v3  ;;  %v379_v16 = vld [vmem:[%s501_s1 + $0x8] sm:$0xff]   ;;  %v381_v18 = vld [vmem:[%s501_s1] sm:$0xff]  }
   0x8   :  { %326 = vmatprep.subr.bf16.mxu0 %v370_v4  ;;  %352 = vmatprep.subr.bf16.mxu1 %v370_v4  ;;  %v295_v25 = vld [vmem:[%s503_s2] ss:$0 sm:$0xff] }
   0x9   :  { %213 = vmatprep.mubr.bf16.mxu1 %v299_v13 }
   0xb   :  { %327 = vmatpush3.bf16.msra.mxu0 %v371_v5  ;;  %360 = vmatpush3.bf16.msra.mxu1 %v371_v5 }
   0xc   :  { %328 = vmatprep.subr.bf16.mxu0 %v372_v6  ;;  %353 = vmatprep.subr.bf16.mxu1 %v372_v6 }
   0xf   :  { %329 = vmatpush3.bf16.msra.mxu0 %v373_v7  ;;  %361 = vmatpush3.bf16.msra.mxu1 %v373_v7 }
  0x10   :  { %330 = vmatprep.subr.bf16.mxu0 %v374_v8  ;;  %354 = vmatprep.subr.bf16.mxu1 %v374_v8 }
  0x13   :  { %331 = vmatpush3.bf16.msra.mxu0 %v375_v9  ;;  %362 = vmatpush3.bf16.msra.mxu1 %v375_v9 }
  0x14   :  { %332 = vmatprep.subr.bf16.mxu0 %v376_v10  ;;  %355 = vmatprep.subr.bf16.mxu1 %v376_v10 }
  0x17   :  { %333 = vmatpush3.bf16.msra.mxu0 %v377_v14  ;;  %363 = vmatpush3.bf16.msra.mxu1 %v377_v14 }
  0x18   :  { %334 = vmatprep.subr.bf16.mxu0 %v378_v15  ;;  %356 = vmatprep.subr.bf16.mxu1 %v378_v15 }
  0x1b   :  { %335 = vmatpush3.bf16.msra.mxu0 %v379_v16  ;;  %364 = vmatpush3.bf16.msra.mxu1 %v379_v16 }
  0x1c   :  { %336 = vmatprep.subr.bf16.mxu0 %v380_v17  ;;  %357 = vmatprep.subr.bf16.mxu1 %v380_v17 }
  0x1f   :  { %337 = vmatpush3.bf16.msra.mxu0 %v381_v18  ;;  %365 = vmatpush3.bf16.msra.mxu1 %v381_v18 }
  0x22   :  { %206 = vmatmul.mubr.bf16.vlgmr.msra.gmra.mxu0 %v382_v19  ;;  %214 = vmatmul.mubr.bf16.vlgmr.msra.gmra.mxu1 %v298_v20 }
  0xe2   :  { %v338_v23 = vpop.f32.mrf.mxu0  ;;  %v344_v24 = vpop.f32.mrf.mxu1 }
  0xe4   :  { %v339_v26 = vpop.f32.mrf.mxu0  ;;  %v345_v27 = vpop.f32.mrf.mxu1 }
  0xe5   :  { %v340_v29 = vadd.f32 %v339_v26, %v338_v23  ;;  %v346_v30 = vadd.f32 %v345_v27, %v344_v24 }
  0xe6   :  { %v341_v31 = vpop.f32.mrf.mxu0  ;;  %v347_v32 = vpop.f32.mrf.mxu1 }
  0xe7   :  { %v208_v33 = vadd.f32 %v340_v29, %v295_v25  ;;  %v216_v34 = vadd.f32 %v346_v30, %v295_v25 }
  0xe8   :  { %v342_v35 = vpop.f32.mrf.mxu0  ;;  %v348_v36 = vpop.f32.mrf.mxu1 }
  0xe9   :  { %v319_v37 = vpack.c.bf16 %v208_v33, %v208_v33  ;;  %v321_v38 = vpack.c.bf16 %v216_v34, %v216_v34  ;;  %v343_v39 = vadd.f32 %v342_v35, %v341_v31  ;;  %v253_v40 = vsel %vm250_vm2, %v216_v34, 0.0 }
  0xea   :  { %v268_v41 = vmul.f32 %v208_v33, %v208_v33  ;;  %v255_v43 = vsel %vm254_vm3, %v208_v33, 0.0  ;;  %v270_v44 = vmul.f32 %v253_v40, %v253_v40  ;;  %v259_v50 = vsel %vm258_vm4, %v253_v40, 0.0 }
  0xeb   :  { %235 = vst.msk [vmem:[%s504_s3] sm:$0xf] %vm234_vm0, %v319_v37  ;;  %v211_v42 = vadd.f32 %v343_v39, %v295_v25 }
  0xec   :  { %238 = vst.msk [vmem:[%s504_s3 + $0x8] sm:$0x1] %vm237_vm1, %v321_v38  ;;  %v271_v49 = vsel %vm254_vm3, %v268_v41, 0.0  ;;  %v274_v54 = vsel %vm258_vm4, %v270_v44, 0.0 }
  0xed   :  { %v320_v45 = vpack.c.bf16 %v211_v42, %v211_v42  ;;  %v256_v46 = vsel %vm254_vm3, %v211_v42, 0.0  ;;  %v269_v47 = vmul.f32 %v211_v42, %v211_v42 }
  0xee   :  { %v257_v48 = vadd.f32 %v256_v46, %v255_v43 }
  0xef   :  { %236 = vst.msk [vmem:[%s504_s3 + $0x4] sm:$0xf] %vm234_vm0, %v320_v45  ;;  %v272_v51 = vsel %vm254_vm3, %v269_v47, 0.0 }
  0xf0   :  { %v260_v52 = vadd.f32 %v259_v50, %v257_v48  ;;  %v273_v53 = vadd.f32 %v272_v51, %v271_v49 }
  0xf2   :  { %v261_v55 = vrot.slane %v260_v52, 4  ;;  %v275_v56 = vadd.f32 %v274_v54, %v273_v53 }
  0xf4   :  { %v262_v57 = vadd.f32 %v261_v55, %v260_v52  ;;  %v276_v58 = vrot.slane %v275_v56, 4 }
  0xf6   :  { %v263_v59 = vrot.slane %v262_v57, 2  ;;  %v277_v60 = vadd.f32 %v276_v58, %v275_v56 }
  0xf8   :  { %v264_v61 = vadd.f32 %v263_v59, %v262_v57  ;;  %v278_v62 = vrot.slane %v277_v60, 2 }
  0xfa   :  { %v265_v63 = vrot.slane %v264_v61, 1  ;;  %v279_v0 = vadd.f32 %v278_v62, %v277_v60 }
  0xfc   :  { %v266_v1 = vadd.f32 %v265_v63, %v264_v61  ;;  %v280_v2 = vrot.slane %v279_v0, 1 }
  0xfe   :  { %267 = vst.msk [vmem:[%s505_s4] sm:$0x1] %vm237_vm1, %v266_v1  ;;  %v281_v3 = vadd.f32 %v280_v2, %v279_v0 }
 0x100   :  { %282 = vst.msk [vmem:[%s506_s5] sm:$0x1] %vm237_vm1, %v281_v3 }

// kernel: nlayer_discriminator_forward.8
= control target key start
LH: loop header
LB: loop body
LE: loop exit
PB: predicated region body
PF: predicated region fallthrough
CT: control target
= control target key end

     0   :  { %vm443_vm0 = vcmask 519168   ;;  %vm467_vm1 = vcmask 523264   ;;  %vm481_vm2 = vcmask 516096   ;;  %s845_s1 = inlined_call_operand.vmem [shape: bf16[512,64], index: 1, kind: input, shape index: {}]   ;;  %s846_s0 = inlined_call_operand.vmem [shape: bf16[32,512], index: 0, kind: input, shape index: {}]   ;;  %s847_s2 = inlined_call_operand.vmem [shape: f32[1,64], index: 2, kind: input, shape index: {}]   ;;  %s848_s3 = inlined_call_operand.vmem [shape: bf16[32,64], index: 3, kind: output, shape index: {0}]   ;;  %s849_s4 = inlined_call_operand.vmem [shape: f32[1,1,64], index: 4, kind: output, shape index: {1}]   ;;  %s850_s5 = inlined_call_operand.vmem [shape: f32[1,1,64], index: 5, kind: output, shape index: {2}]  }
   0x1   :  { %v618_v0 = vld [vmem:[%s845_s1 + $0x78] sm:$0xff]   ;;  %v622_v4 = vld [vmem:[%s845_s1 + $0x70] sm:$0xff]   ;;  %v626_v8 = vld [vmem:[%s845_s1 + $0x68] sm:$0xff]  }
   0x2   :  { %v619_v1 = vld [vmem:[%s845_s1 + $0xf8] sm:$0xff]   ;;  %562 = vmatprep.subr.bf16.mxu0 %v618_v0  ;;  %v623_v5 = vld [vmem:[%s845_s1 + $0xf0] sm:$0xff]   ;;  %v627_v9 = vld [vmem:[%s845_s1 + $0xe8] sm:$0xff]  }
   0x3   :  { %v620_v2 = vld [vmem:[%s845_s1 + $0x38] sm:$0xff]   ;;  %590 = vmatprep.subr.bf16.mxu1 %v619_v1  ;;  %v624_v6 = vld [vmem:[%s845_s1 + $0x30] sm:$0xff]   ;;  %v628_v10 = vld [vmem:[%s845_s1 + $0x28] sm:$0xff]  }
   0x4   :  { %v621_v3 = vld [vmem:[%s845_s1 + $0xb8] sm:$0xff]   ;;  %563 = vmatpush3.bf16.msra.mxu0 %v620_v2  ;;  %v625_v7 = vld [vmem:[%s845_s1 + $0xb0] sm:$0xff]   ;;  %v629_v11 = vld [vmem:[%s845_s1 + $0xa8] sm:$0xff]  }
   0x5   :  { %591 = vmatpush3.bf16.msra.mxu1 %v621_v3  ;;  %564 = vmatprep.subr.bf16.mxu0 %v622_v4  ;;  %v630_v12 = vld [vmem:[%s845_s1 + $0x60] sm:$0xff]   ;;  %v634_v16 = vld [vmem:[%s845_s1 + $0x58] sm:$0xff]   ;;  %v638_v20 = vld [vmem:[%s845_s1 + $0x50] sm:$0xff]  }
   0x6   :  { %592 = vmatprep.subr.bf16.mxu1 %v623_v5  ;;  %v631_v13 = vld [vmem:[%s845_s1 + $0xe0] sm:$0xff]   ;;  %v635_v17 = vld [vmem:[%s845_s1 + $0xd8] sm:$0xff]   ;;  %v639_v21 = vld [vmem:[%s845_s1 + $0xd0] sm:$0xff]  }
   0x7   :  { %v632_v14 = vld [vmem:[%s845_s1 + $0x20] sm:$0xff]   ;;  %v636_v18 = vld [vmem:[%s845_s1 + $0x18] sm:$0xff]   ;;  %v640_v22 = vld [vmem:[%s845_s1 + $0x10] sm:$0xff]  }
   0x8   :  { %565 = vmatpush3.bf16.msra.mxu0 %v624_v6  ;;  %v633_v15 = vld [vmem:[%s845_s1 + $0xa0] sm:$0xff]   ;;  %v637_v19 = vld [vmem:[%s845_s1 + $0x98] sm:$0xff]   ;;  %v641_v23 = vld [vmem:[%s845_s1 + $0x90] sm:$0xff]  }
   0x9   :  { %593 = vmatpush3.bf16.msra.mxu1 %v625_v7  ;;  %566 = vmatprep.subr.bf16.mxu0 %v626_v8  ;;  %v642_v24 = vld [vmem:[%s845_s1 + $0x48] sm:$0xff]   ;;  %v646_v28 = vld [vmem:[%s845_s1 + $0x40] sm:$0xff]  }
   0xa   :  { %594 = vmatprep.subr.bf16.mxu1 %v627_v9  ;;  %v643_v25 = vld [vmem:[%s845_s1 + $0xc8] sm:$0xff]   ;;  %v647_v29 = vld [vmem:[%s845_s1 + $0xc0] sm:$0xff]  }
   0xb   :  { %v644_v26 = vld [vmem:[%s845_s1 + $0x8] sm:$0xff]   ;;  %v648_v30 = vld [vmem:[%s845_s1] sm:$0xff]  }
   0xc   :  { %567 = vmatpush3.bf16.msra.mxu0 %v628_v10  ;;  %v645_v27 = vld [vmem:[%s845_s1 + $0x88] sm:$0xff]   ;;  %v649_v31 = vld [vmem:[%s845_s1 + $0x80] sm:$0xff]  }
   0xd   :  { %595 = vmatpush3.bf16.msra.mxu1 %v629_v11  ;;  %568 = vmatprep.subr.bf16.mxu0 %v630_v12  ;;  %v650_v32 = vld [vmem:[%s846_s0] ss:$16 sps:$4 sm:$0xff]   ;;  %v652_v33 = vld [vmem:[%s846_s0 + $0x4] ss:$16 sps:$4 sm:$0xff]   ;;  %v653_v34 = vld [vmem:[%s846_s0 + $0x8] ss:$16 sps:$4 sm:$0xff]  }
   0xe   :  { %596 = vmatprep.subr.bf16.mxu1 %v631_v13  ;;  %v655_v35 = vld [vmem:[%s846_s0 + $0xc] ss:$16 sps:$4 sm:$0xff]   ;;  %361 = vmatprep.mubr.bf16.mxu0 %v652_v33  ;;  %v656_v36 = vld [vmem:[%s846_s0 + $0x24] ss:$16 sps:$4 sm:$0xff]   ;;  %v660_v38 = vld [vmem:[%s846_s0 + $0x20] ss:$16 sps:$4 sm:$0xff]  }
   0xf   :  { %410 = vmatprep.mubr.bf16.mxu1 %v655_v35  ;;  %v658_v37 = vld [vmem:[%s846_s0 + $0x2c] ss:$16 sps:$4 sm:$0xff]   ;;  %v661_v39 = vld [vmem:[%s846_s0 + $0x28] ss:$16 sps:$4 sm:$0xff]   ;;  %v513_v42 = vld [vmem:[%s847_s2] ss:$0 sm:$0xff] }
  0x10   :  { %569 = vmatpush3.bf16.msra.mxu0 %v632_v14 }
  0x11   :  { %597 = vmatpush3.bf16.msra.mxu1 %v633_v15  ;;  %570 = vmatprep.subr.bf16.mxu0 %v634_v16 }
  0x12   :  { %598 = vmatprep.subr.bf16.mxu1 %v635_v17 }
  0x14   :  { %571 = vmatpush3.bf16.msra.mxu0 %v636_v18 }
  0x15   :  { %599 = vmatpush3.bf16.msra.mxu1 %v637_v19  ;;  %572 = vmatprep.subr.bf16.mxu0 %v638_v20 }
  0x16   :  { %600 = vmatprep.subr.bf16.mxu1 %v639_v21 }
  0x18   :  { %573 = vmatpush3.bf16.msra.mxu0 %v640_v22 }
  0x19   :  { %601 = vmatpush3.bf16.msra.mxu1 %v641_v23  ;;  %574 = vmatprep.subr.bf16.mxu0 %v642_v24 }
  0x1a   :  { %602 = vmatprep.subr.bf16.mxu1 %v643_v25 }
  0x1c   :  { %575 = vmatpush3.bf16.msra.mxu0 %v644_v26 }
  0x1d   :  { %603 = vmatpush3.bf16.msra.mxu1 %v645_v27  ;;  %576 = vmatprep.subr.bf16.mxu0 %v646_v28 }
  0x1e   :  { %604 = vmatprep.subr.bf16.mxu1 %v647_v29 }
  0x20   :  { %577 = vmatpush3.bf16.msra.mxu0 %v648_v30 }
  0x21   :  { %605 = vmatpush3.bf16.msra.mxu1 %v649_v31 }
  0x23   :  { %362 = vmatmul.mubr.bf16.vlgmr.msra.gmra.mxu0 %v650_v32 }
  0x24   :  { %411 = vmatmul.mubr.bf16.vlgmr.msra.gmra.mxu1 %v653_v34  ;;  %369 = vmatprep.mubr.bf16.mxu0 %v656_v36 }
  0x25   :  { %418 = vmatprep.mubr.bf16.mxu1 %v658_v37 }
  0x2b   :  { %370 = vmatmul.mubr.bf16.gmra.mxu0 %v660_v38 }
  0x2c   :  { %419 = vmatmul.mubr.bf16.gmra.mxu1 %v661_v39 }
  0xe3   :  { %v578_v40 = vpop.f32.mrf.mxu0 }
  0xe4   :  { %v606_v41 = vpop.f32.mrf.mxu1 }
  0xe5   :  { %v579_v43 = vpop.f32.mrf.mxu0 }
  0xe6   :  { %v580_v44 = vadd.f32 %v579_v43, %v578_v40  ;;  %v607_v45 = vpop.f32.mrf.mxu1 }
  0xe7   :  { %v581_v46 = vpop.f32.mrf.mxu0  ;;  %v608_v48 = vadd.f32 %v607_v45, %v606_v41 }
  0xe8   :  { %v364_v47 = vadd.f32 %v580_v44, %v513_v42  ;;  %v609_v49 = vpop.f32.mrf.mxu1 }
  0xe9   :  { %v582_v50 = vpop.f32.mrf.mxu0 }
  0xea   :  { %v413_v51 = vadd.f32 %v608_v48, %v364_v47  ;;  %v583_v52 = vadd.f32 %v582_v50, %v581_v46  ;;  %v610_v53 = vpop.f32.mrf.mxu1 }
  0xeb   :  { %v584_v54 = vpop.f32.mrf.mxu0  ;;  %v611_v57 = vadd.f32 %v610_v53, %v609_v49 }
  0xec   :  { %v558_v55 = vpack.c.bf16 %v413_v51, %v413_v51  ;;  %v367_v56 = vadd.f32 %v583_v52, %v513_v42  ;;  %v612_v58 = vpop.f32.mrf.mxu1  ;;  %v483_v6 = vmul.f32 %v413_v51, %v413_v51  ;;  %v468_v11 = vsel %vm467_vm1, %v413_v51, 0.0 }
  0xed   :  { %v585_v59 = vpop.f32.mrf.mxu0 }
  0xee   :  { %444 = vst.msk [vmem:[%s848_s3] sm:$0xf] %vm443_vm0, %v558_v55  ;;  %v416_v60 = vadd.f32 %v611_v57, %v367_v56  ;;  %v586_v61 = vadd.f32 %v585_v59, %v584_v54  ;;  %v613_v62 = vpop.f32.mrf.mxu1  ;;  %v487_v19 = vsel %vm467_vm1, %v483_v6, 0.0 }
  0xef   :  { %v587_v63 = vpop.f32.mrf.mxu0  ;;  %v614_v3 = vadd.f32 %v613_v62, %v612_v58 }
  0xf0   :  { %v559_v0 = vpack.c.bf16 %v416_v60, %v416_v60  ;;  %v484_v1 = vmul.f32 %v416_v60, %v416_v60  ;;  %v372_v2 = vadd.f32 %v586_v61, %v513_v42  ;;  %v615_v4 = vpop.f32.mrf.mxu1  ;;  %v469_v7 = vsel %vm467_vm1, %v416_v60, 0.0 }
  0xf1   :  { %v588_v5 = vpop.f32.mrf.mxu0  ;;  %v470_v18 = vadd.f32 %v469_v7, %v468_v11 }
  0xf2   :  { %445 = vst.msk [vmem:[%s848_s3 + $0x4] sm:$0xf] %vm443_vm0, %v559_v0  ;;  %v421_v8 = vadd.f32 %v614_v3, %v372_v2  ;;  %v589_v9 = vadd.f32 %v588_v5, %v587_v63  ;;  %v616_v10 = vpop.f32.mrf.mxu1  ;;  %v488_v12 = vsel %vm467_vm1, %v484_v1, 0.0 }
  0xf3   :  { %v617_v13 = vadd.f32 %v616_v10, %v615_v4  ;;  %v489_v22 = vadd.f32 %v488_v12, %v487_v19 }
  0xf4   :  { %v560_v14 = vpack.c.bf16 %v421_v8, %v421_v8  ;;  %v471_v15 = vsel %vm467_vm1, %v421_v8, 0.0  ;;  %v485_v16 = vmul.f32 %v421_v8, %v421_v8  ;;  %v375_v17 = vadd.f32 %v589_v9, %v513_v42 }
  0xf5   :  { %v472_v23 = vadd.f32 %v471_v15, %v470_v18 }
  0xf6   :  { %446 = vst.msk [vmem:[%s848_s3 + $0x8] sm:$0xf] %vm443_vm0, %v560_v14  ;;  %v490_v20 = vsel %vm467_vm1, %v485_v16, 0.0  ;;  %v424_v21 = vadd.f32 %v617_v13, %v375_v17 }
  0xf7   :  { %v491_v27 = vadd.f32 %v490_v20, %v489_v22 }
  0xf8   :  { %v561_v24 = vpack.c.bf16 %v424_v21, %v424_v21  ;;  %v473_v25 = vsel %vm467_vm1, %v424_v21, 0.0  ;;  %v486_v26 = vmul.f32 %v424_v21, %v424_v21 }
  0xf9   :  { %v474_v28 = vadd.f32 %v473_v25, %v472_v23 }
  0xfa   :  { %447 = vst.msk [vmem:[%s848_s3 + $0xc] sm:$0xf] %vm443_vm0, %v561_v24  ;;  %v492_v29 = vsel %vm467_vm1, %v486_v26, 0.0 }
  0xfb   :  { %v475_v30 = vrot.slane %v474_v28, 4  ;;  %v493_v31 = vadd.f32 %v492_v29, %v491_v27 }
  0xfd   :  { %v476_v32 = vadd.f32 %v475_v30, %v474_v28  ;;  %v494_v33 = vrot.slane %v493_v31, 4 }
  0xff   :  { %v477_v34 = vrot.slane %v476_v32, 2  ;;  %v495_v35 = vadd.f32 %v494_v33, %v493_v31 }
 0x101   :  { %v478_v36 = vadd.f32 %v477_v34, %v476_v32  ;;  %v496_v37 = vrot.slane %v495_v35, 2 }
 0x103   :  { %v479_v38 = vrot.slane %v478_v36, 1  ;;  %v497_v39 = vadd.f32 %v496_v37, %v495_v35 }
 0x105   :  { %v480_v40 = vadd.f32 %v479_v38, %v478_v36  ;;  %v498_v41 = vrot.slane %v497_v39, 1 }
 0x107   :  { %482 = vst.msk [vmem:[%s849_s4] sm:$0x1] %vm481_vm2, %v480_v40  ;;  %v499_v42 = vadd.f32 %v498_v41, %v497_v39 }
 0x109   :  { %500 = vst.msk [vmem:[%s850_s5] sm:$0x1] %vm481_vm2, %v499_v42 }

// kernel: nlayer_discriminator_forward.9
= control target key start
LH: loop header
LB: loop body
LE: loop exit
PB: predicated region body
PF: predicated region fallthrough
CT: control target
= control target key end

     0   :  { %s1659_s1 = inlined_call_operand.vmem [shape: bf16[1024,128], index: 1, kind: input, shape index: {}]   ;;  %s1660_s0 = inlined_call_operand.vmem [shape: bf16[50,1024], index: 0, kind: input, shape index: {}]   ;;  %s1661_s2 = inlined_call_operand.vmem [shape: f32[1,128], index: 2, kind: input, shape index: {}]   ;;  %s1662_s3 = inlined_call_operand.vmem [shape: f32[50,128], index: 3, kind: output, shape index: {}]  }
   0x1   :  { %v1234_v0 = vld [vmem:[%s1659_s1 + $0x78] sm:$0xff]   ;;  %v1238_v4 = vld [vmem:[%s1659_s1 + $0x70] sm:$0xff]   ;;  %v1242_v8 = vld [vmem:[%s1659_s1 + $0x68] sm:$0xff]  }
   0x2   :  { %v1235_v1 = vld [vmem:[%s1659_s1 + $0xf8] sm:$0xff]   ;;  %1074 = vmatprep.subr.bf16.mxu0 %v1234_v0  ;;  %v1239_v5 = vld [vmem:[%s1659_s1 + $0xf0] sm:$0xff]   ;;  %v1243_v9 = vld [vmem:[%s1659_s1 + $0xe8] sm:$0xff]  }
   0x3   :  { %v1236_v2 = vld [vmem:[%s1659_s1 + $0x38] sm:$0xff]   ;;  %1114 = vmatprep.subr.bf16.mxu1 %v1235_v1  ;;  %v1240_v6 = vld [vmem:[%s1659_s1 + $0x30] sm:$0xff]   ;;  %v1244_v10 = vld [vmem:[%s1659_s1 + $0x28] sm:$0xff]  }
   0x4   :  { %v1237_v3 = vld [vmem:[%s1659_s1 + $0xb8] sm:$0xff]   ;;  %1075 = vmatpush3.bf16.msra.mxu0 %v1236_v2  ;;  %v1241_v7 = vld [vmem:[%s1659_s1 + $0xb0] sm:$0xff]   ;;  %v1245_v11 = vld [vmem:[%s1659_s1 + $0xa8] sm:$0xff]  }
   0x5   :  { %1115 = vmatpush3.bf16.msra.mxu1 %v1237_v3  ;;  %1076 = vmatprep.subr.bf16.mxu0 %v1238_v4  ;;  %v1246_v12 = vld [vmem:[%s1659_s1 + $0x60] sm:$0xff]   ;;  %v1250_v16 = vld [vmem:[%s1659_s1 + $0x58] sm:$0xff]   ;;  %v1254_v20 = vld [vmem:[%s1659_s1 + $0x50] sm:$0xff]  }
   0x6   :  { %1116 = vmatprep.subr.bf16.mxu1 %v1239_v5  ;;  %v1247_v13 = vld [vmem:[%s1659_s1 + $0xe0] sm:$0xff]   ;;  %v1251_v17 = vld [vmem:[%s1659_s1 + $0xd8] sm:$0xff]   ;;  %v1255_v21 = vld [vmem:[%s1659_s1 + $0xd0] sm:$0xff]  }
   0x7   :  { %v1248_v14 = vld [vmem:[%s1659_s1 + $0x20] sm:$0xff]   ;;  %v1252_v18 = vld [vmem:[%s1659_s1 + $0x18] sm:$0xff]   ;;  %v1256_v22 = vld [vmem:[%s1659_s1 + $0x10] sm:$0xff]  }
   0x8   :  { %1077 = vmatpush3.bf16.msra.mxu0 %v1240_v6  ;;  %v1249_v15 = vld [vmem:[%s1659_s1 + $0xa0] sm:$0xff]   ;;  %v1253_v19 = vld [vmem:[%s1659_s1 + $0x98] sm:$0xff]   ;;  %v1257_v23 = vld [vmem:[%s1659_s1 + $0x90] sm:$0xff]  }
   0x9   :  { %1117 = vmatpush3.bf16.msra.mxu1 %v1241_v7  ;;  %1078 = vmatprep.subr.bf16.mxu0 %v1242_v8  ;;  %v1258_v24 = vld [vmem:[%s1659_s1 + $0x48] sm:$0xff]   ;;  %v1262_v28 = vld [vmem:[%s1659_s1 + $0x40] sm:$0xff]   ;;  %v1266_v40 = vld [vmem:[%s1659_s1 + $0x178] sm:$0xff]  }
   0xa   :  { %1118 = vmatprep.subr.bf16.mxu1 %v1243_v9  ;;  %v1259_v25 = vld [vmem:[%s1659_s1 + $0xc8] sm:$0xff]   ;;  %v1263_v29 = vld [vmem:[%s1659_s1 + $0xc0] sm:$0xff]   ;;  %v1267_v41 = vld [vmem:[%s1659_s1 + $0x1f8] sm:$0xff]  }
   0xb   :  { %v1260_v26 = vld [vmem:[%s1659_s1 + $0x8] sm:$0xff]   ;;  %v1264_v30 = vld [vmem:[%s1659_s1] sm:$0xff]   ;;  %v1268_v42 = vld [vmem:[%s1659_s1 + $0x138] sm:$0xff]  }
   0xc   :  { %1079 = vmatpush3.bf16.msra.mxu0 %v1244_v10  ;;  %v1261_v27 = vld [vmem:[%s1659_s1 + $0x88] sm:$0xff]   ;;  %v1265_v31 = vld [vmem:[%s1659_s1 + $0x80] sm:$0xff]   ;;  %v1269_v43 = vld [vmem:[%s1659_s1 + $0x1b8] sm:$0xff]  }
   0xd   :  { %1119 = vmatpush3.bf16.msra.mxu1 %v1245_v11  ;;  %1080 = vmatprep.subr.bf16.mxu0 %v1246_v12  ;;  %v15_v32 = vld [vmem:[%s1660_s0] sm:$0xff]  ;;  %v16_v34 = vld [vmem:[%s1660_s0 + $0x8] sm:$0xff]  ;;  %v1270_v44 = vld [vmem:[%s1659_s1 + $0x170] sm:$0xff]  }
   0xe   :  { %1120 = vmatprep.subr.bf16.mxu1 %v1247_v13  ;;  %v19_v33 = vld [vmem:[%s1660_s0 + $0x20] sm:$0xff]  ;;  %v20_v37 = vld [vmem:[%s1660_s0 + $0x28] sm:$0xff]  ;;  %v1271_v45 = vld [vmem:[%s1659_s1 + $0x1f0] sm:$0xff]  }
   0xf   :  { %v978_v35 = vcombine.low %v15_v32, %v19_v33  ;;  %v979_v36 = vcombine.high %v15_v32, %v19_v33  ;;  %v980_v38 = vcombine.low %v16_v34, %v20_v37  ;;  %v981_v39 = vcombine.high %v16_v34, %v20_v37  ;;  %v1272_v46 = vld [vmem:[%s1659_s1 + $0x130] sm:$0xff]   ;;  %v23_v48 = vld [vmem:[%s1660_s0 + $0x40] sm:$0xff]  ;;  %v24_v51 = vld [vmem:[%s1660_s0 + $0x48] sm:$0xff] }
  0x10   :  { %1081 = vmatpush3.bf16.msra.mxu0 %v1248_v14  ;;  %v1273_v47 = vld [vmem:[%s1659_s1 + $0x1b0] sm:$0xff]   ;;  %v27_v49 = vld [vmem:[%s1660_s0 + $0x60] sm:$0xff]  ;;  %v28_v52 = vld [vmem:[%s1660_s0 + $0x68] sm:$0xff] }
  0x11   :  { %1121 = vmatpush3.bf16.msra.mxu1 %v1249_v15  ;;  %1082 = vmatprep.subr.bf16.mxu0 %v1250_v16  ;;  %v987_v50 = vcombine.high %v23_v48, %v27_v49  ;;  %v986_v53 = vcombine.low %v23_v48, %v27_v49  ;;  %v989_v54 = vcombine.high %v24_v51, %v28_v52  ;;  %v1274_v56 = vld [vmem:[%s1659_s1 + $0x168] sm:$0xff]   ;;  %v1278_v60 = vld [vmem:[%s1659_s1 + $0x160] sm:$0xff]   ;;  %v1282_v8 = vld [vmem:[%s1659_s1 + $0x158] sm:$0xff]  }
  0x12   :  { %1122 = vmatprep.subr.bf16.mxu1 %v1251_v17  ;;  %742 = vmatprep.mubr.bf16.mxu0 %v979_v36  ;;  %v988_v55 = vcombine.low %v24_v51, %v28_v52  ;;  %v1275_v57 = vld [vmem:[%s1659_s1 + $0x1e8] sm:$0xff]   ;;  %v1279_v61 = vld [vmem:[%s1659_s1 + $0x1e0] sm:$0xff]   ;;  %v1283_v9 = vld [vmem:[%s1659_s1 + $0x1d8] sm:$0xff]  }
  0x13   :  { %806 = vmatprep.mubr.bf16.mxu1 %v981_v39  ;;  %v1276_v58 = vld [vmem:[%s1659_s1 + $0x128] sm:$0xff]   ;;  %v1280_v62 = vld [vmem:[%s1659_s1 + $0x120] sm:$0xff]   ;;  %v1284_v10 = vld [vmem:[%s1659_s1 + $0x118] sm:$0xff]  }
  0x14   :  { %1083 = vmatpush3.bf16.msra.mxu0 %v1252_v18  ;;  %v1277_v59 = vld [vmem:[%s1659_s1 + $0x1a8] sm:$0xff]   ;;  %v1281_v63 = vld [vmem:[%s1659_s1 + $0x1a0] sm:$0xff]   ;;  %v1285_v11 = vld [vmem:[%s1659_s1 + $0x198] sm:$0xff]  }
  0x15   :  { %1123 = vmatpush3.bf16.msra.mxu1 %v1253_v19  ;;  %1084 = vmatprep.subr.bf16.mxu0 %v1254_v20  ;;  %v31_v0 = vld [vmem:[%s1660_s0 + $0x80] sm:$0xff]  ;;  %v32_v2 = vld [vmem:[%s1660_s0 + $0x88] sm:$0xff]  ;;  %v1286_v12 = vld [vmem:[%s1659_s1 + $0x150] sm:$0xff]  }
  0x16   :  { %1124 = vmatprep.subr.bf16.mxu1 %v1255_v21  ;;  %v35_v1 = vld [vmem:[%s1660_s0 + $0xa0] sm:$0xff]  ;;  %v36_v3 = vld [vmem:[%s1660_s0 + $0xa8] sm:$0xff]  ;;  %v1287_v13 = vld [vmem:[%s1659_s1 + $0x1d0] sm:$0xff]  }
  0x17   :  { %v995_v4 = vcombine.high %v31_v0, %v35_v1  ;;  %v997_v5 = vcombine.high %v32_v2, %v36_v3  ;;  %v994_v6 = vcombine.low %v31_v0, %v35_v1  ;;  %v996_v7 = vcombine.low %v32_v2, %v36_v3  ;;  %v1288_v14 = vld [vmem:[%s1659_s1 + $0x110] sm:$0xff]   ;;  %v39_v16 = vld [vmem:[%s1660_s0 + $0xc0] sm:$0x11]  ;;  %v40_v17 = vld [vmem:[%s1660_s0 + $0xc8] sm:$0x11] }
  0x18   :  { %1085 = vmatpush3.bf16.msra.mxu0 %v1256_v22  ;;  %v1289_v15 = vld [vmem:[%s1659_s1 + $0x190] sm:$0xff]   ;;  %v1003_v18 = vcombine.high %v39_v16, %v39_v16  ;;  %v1005_v19 = vcombine.high %v40_v17, %v40_v17  ;;  %v1002_v20 = vcombine.low %v39_v16, %v39_v16  ;;  %v1294_v21 = vld [vmem:[%s1659_s1 + $0x148] sm:$0xff]   ;;  %v1004_v22 = vcombine.low %v40_v17, %v40_v17  ;;  %v18_v32 = vld [vmem:[%s1660_s0 + $0x18] sm:$0xff] }
  0x19   :  { %1125 = vmatpush3.bf16.msra.mxu1 %v1257_v23  ;;  %1086 = vmatprep.subr.bf16.mxu0 %v1258_v24  ;;  %v1295_v23 = vld [vmem:[%s1659_s1 + $0x1c8] sm:$0xff]   ;;  %v22_v33 = vld [vmem:[%s1660_s0 + $0x38] sm:$0xff]  ;;  %v25_v37 = vld [vmem:[%s1660_s0 + $0x50] sm:$0xff] }
  0x1a   :  { %1126 = vmatprep.subr.bf16.mxu1 %v1259_v25  ;;  %v1296_v24 = vld [vmem:[%s1659_s1 + $0x108] sm:$0xff]   ;;  %v984_v36 = vcombine.low %v18_v32, %v22_v33  ;;  %v26_v39 = vld [vmem:[%s1660_s0 + $0x58] sm:$0xff]  ;;  %v41_v52 = vld [vmem:[%s1660_s0 + $0xd0] sm:$0x11] }
  0x1b   :  { %v1297_v25 = vld [vmem:[%s1659_s1 + $0x188] sm:$0xff]  }
  0x1c   :  { %1087 = vmatpush3.bf16.msra.mxu0 %v1260_v26  ;;  %v1298_v26 = vld [vmem:[%s1659_s1 + $0x140] sm:$0xff]  }
  0x1d   :  { %1127 = vmatpush3.bf16.msra.mxu1 %v1261_v27  ;;  %1088 = vmatprep.subr.bf16.mxu0 %v1262_v28  ;;  %v1299_v27 = vld [vmem:[%s1659_s1 + $0x1c0] sm:$0xff]  }
  0x1e   :  { %1128 = vmatprep.subr.bf16.mxu1 %v1263_v29  ;;  %v1300_v28 = vld [vmem:[%s1659_s1 + $0x100] sm:$0xff]  }
  0x1f   :  { %v1301_v29 = vld [vmem:[%s1659_s1 + $0x180] sm:$0xff]  }
  0x20   :  { %1089 = vmatpush3.bf16.msra.mxu0 %v1264_v30  ;;  %v17_v30 = vld [vmem:[%s1660_s0 + $0x10] sm:$0xff] }
  0x21   :  { %1129 = vmatpush3.bf16.msra.mxu1 %v1265_v31  ;;  %1154 = vmatprep.subr.bf16.mxu0 %v1266_v40  ;;  %v21_v31 = vld [vmem:[%s1660_s0 + $0x30] sm:$0xff]  ;;  %v985_v40 = vcombine.high %v18_v32, %v22_v33 }
  0x22   :  { %1194 = vmatprep.subr.bf16.mxu1 %v1267_v41  ;;  %v982_v34 = vcombine.low %v17_v30, %v21_v31 }
  0x23   :  { %743 = vmatmul.mubr.bf16.vlgmr.msra.gmra.mxu0 %v978_v35  ;;  %v983_v35 = vcombine.high %v17_v30, %v21_v31 }
  0x24   :  { %807 = vmatmul.mubr.bf16.vlgmr.msra.gmra.mxu1 %v980_v38  ;;  %1155 = vmatpush3.bf16.msra.mxu0 %v1268_v42  ;;  %v29_v38 = vld [vmem:[%s1660_s0 + $0x70] sm:$0xff]  ;;  %v30_v42 = vld [vmem:[%s1660_s0 + $0x78] sm:$0xff] }
  0x25   :  { %1195 = vmatpush3.bf16.msra.mxu1 %v1269_v43  ;;  %1156 = vmatprep.subr.bf16.mxu0 %v1270_v44  ;;  %v991_v41 = vcombine.high %v25_v37, %v29_v38  ;;  %v993_v43 = vcombine.high %v26_v39, %v30_v42  ;;  %v33_v44 = vld [vmem:[%s1660_s0 + $0x90] sm:$0xff]  ;;  %v990_v48 = vcombine.low %v25_v37, %v29_v38 }
  0x26   :  { %1196 = vmatprep.subr.bf16.mxu1 %v1271_v45  ;;  %750 = vmatprep.mubr.bf16.mxu0 %v987_v50  ;;  %v37_v45 = vld [vmem:[%s1660_s0 + $0xb0] sm:$0xff]  ;;  %v992_v49 = vcombine.low %v26_v39, %v30_v42 }
  0x27   :  { %814 = vmatprep.mubr.bf16.mxu1 %v989_v54  ;;  %v999_v50 = vcombine.high %v33_v44, %v37_v45  ;;  %v998_v54 = vcombine.low %v33_v44, %v37_v45 }
  0x28   :  { %1157 = vmatpush3.bf16.msra.mxu0 %v1272_v46  ;;  %v34_v46 = vld [vmem:[%s1660_s0 + $0x98] sm:$0xff] }
  0x29   :  { %1197 = vmatpush3.bf16.msra.mxu1 %v1273_v47  ;;  %1158 = vmatprep.subr.bf16.mxu0 %v1274_v56  ;;  %v38_v47 = vld [vmem:[%s1660_s0 + $0xb8] sm:$0xff]  ;;  %v1007_v56 = vcombine.high %v41_v52, %v41_v52 }
  0x2a   :  { %1198 = vmatprep.subr.bf16.mxu1 %v1275_v57  ;;  %v1001_v51 = vcombine.high %v34_v46, %v38_v47 }
  0x2b   :  { %751 = vmatmul.mubr.bf16.gmra.mxu0 %v986_v53  ;;  %v42_v53 = vld [vmem:[%s1660_s0 + $0xd8] sm:$0x11] }
  0x2c   :  { %815 = vmatmul.mubr.bf16.gmra.mxu1 %v988_v55  ;;  %1159 = vmatpush3.bf16.msra.mxu0 %v1276_v58  ;;  %v1000_v55 = vcombine.low %v34_v46, %v38_v47  ;;  %v1009_v57 = vcombine.high %v42_v53, %v42_v53  ;;  %v1006_v58 = vcombine.low %v41_v52, %v41_v52 }
  0x2d   :  { %1199 = vmatpush3.bf16.msra.mxu1 %v1277_v59  ;;  %1160 = vmatprep.subr.bf16.mxu0 %v1278_v60  ;;  %v1008_v59 = vcombine.low %v42_v53, %v42_v53 }
  0x2e   :  { %1200 = vmatprep.subr.bf16.mxu1 %v1279_v61  ;;  %758 = vmatprep.mubr.bf16.mxu0 %v995_v4 }
  0x2f   :  { %822 = vmatprep.mubr.bf16.mxu1 %v997_v5 }
  0x30   :  { %1161 = vmatpush3.bf16.msra.mxu0 %v1280_v62 }
  0x31   :  { %1201 = vmatpush3.bf16.msra.mxu1 %v1281_v63  ;;  %1162 = vmatprep.subr.bf16.mxu0 %v1282_v8 }
  0x32   :  { %1202 = vmatprep.subr.bf16.mxu1 %v1283_v9 }
  0x33   :  { %759 = vmatmul.mubr.bf16.gmra.mxu0 %v994_v6 }
  0x34   :  { %823 = vmatmul.mubr.bf16.gmra.mxu1 %v996_v7  ;;  %1163 = vmatpush3.bf16.msra.mxu0 %v1284_v10 }
  0x35   :  { %1203 = vmatpush3.bf16.msra.mxu1 %v1285_v11  ;;  %1164 = vmatprep.subr.bf16.mxu0 %v1286_v12 }
  0x36   :  { %1204 = vmatprep.subr.bf16.mxu1 %v1287_v13  ;;  %766 = vmatprep.mubr.bf16.mxu0 %v1003_v18 }
  0x37   :  { %830 = vmatprep.mubr.bf16.mxu1 %v1005_v19 }
  0x38   :  { %1165 = vmatpush3.bf16.msra.mxu0 %v1288_v14 }
  0x39   :  { %1205 = vmatpush3.bf16.msra.mxu1 %v1289_v15  ;;  %1166 = vmatprep.subr.bf16.mxu0 %v1294_v21 }
  0x3a   :  { %1206 = vmatprep.subr.bf16.mxu1 %v1295_v23 }
  0x3b   :  { %767 = vmatmul.mubr.bf16.gmra.mxu0 %v1002_v20 }
  0x3c   :  { %831 = vmatmul.mubr.bf16.gmra.mxu1 %v1004_v22  ;;  %1167 = vmatpush3.bf16.msra.mxu0 %v1296_v24 }
  0x3d   :  { %1207 = vmatpush3.bf16.msra.mxu1 %v1297_v25  ;;  %1168 = vmatprep.subr.bf16.mxu0 %v1298_v26 }
  0x3e   :  { %1208 = vmatprep.subr.bf16.mxu1 %v1299_v27  ;;  %870 = vmatprep.mubr.bf16.mxu0 %v983_v35  ;;  %v1621_v27 = vld [vmem:[%s1661_s2] ss:$0 sm:$0xff] }
  0x3f   :  { %934 = vmatprep.mubr.bf16.mxu1 %v985_v40 }
  0x40   :  { %1169 = vmatpush3.bf16.msra.mxu0 %v1300_v28 }
  0x41   :  { %1209 = vmatpush3.bf16.msra.mxu1 %v1301_v29 }
  0x43   :  { %871 = vmatmul.mubr.bf16.vlgmr.msra.gmra.mxu0 %v982_v34 }
  0x44   :  { %935 = vmatmul.mubr.bf16.vlgmr.msra.gmra.mxu1 %v984_v36  ;;  %878 = vmatprep.mubr.bf16.mxu0 %v991_v41 }
  0x45   :  { %942 = vmatprep.mubr.bf16.mxu1 %v993_v43 }
  0x4b   :  { %879 = vmatmul.mubr.bf16.gmra.mxu0 %v990_v48 }
  0x4c   :  { %943 = vmatmul.mubr.bf16.gmra.mxu1 %v992_v49  ;;  %886 = vmatprep.mubr.bf16.mxu0 %v999_v50 }
  0x4d   :  { %950 = vmatprep.mubr.bf16.mxu1 %v1001_v51 }
  0x53   :  { %887 = vmatmul.mubr.bf16.gmra.mxu0 %v998_v54 }
  0x54   :  { %951 = vmatmul.mubr.bf16.gmra.mxu1 %v1000_v55  ;;  %894 = vmatprep.mubr.bf16.mxu0 %v1007_v56 }
  0x55   :  { %958 = vmatprep.mubr.bf16.mxu1 %v1009_v57 }
  0x5b   :  { %895 = vmatmul.mubr.bf16.gmra.mxu0 %v1006_v58 }
  0x5c   :  { %959 = vmatmul.mubr.bf16.gmra.mxu1 %v1008_v59 }
  0xe3   :  { %v1090_v60 = vpop.f32.mrf.mxu0 }
  0xe4   :  { %v1130_v61 = vpop.f32.mrf.mxu1 }
  0xe5   :  { %v1091_v62 = vpop.f32.mrf.mxu0 }
  0xe6   :  { %v1131_v63 = vpop.f32.mrf.mxu1  ;;  %v1092_v24 = vadd.f32 %v1091_v62, %v1090_v60 }
  0xe7   :  { %v1093_v0 = vpop.f32.mrf.mxu0  ;;  %v1132_v33 = vadd.f32 %v1131_v63, %v1130_v61 }
  0xe8   :  { %v1133_v1 = vpop.f32.mrf.mxu1  ;;  %v745_v31 = vadd.f32 %v1092_v24, %v1621_v27 }
  0xe9   :  { %v1094_v2 = vpop.f32.mrf.mxu0 }
  0xea   :  { %v1134_v3 = vpop.f32.mrf.mxu1  ;;  %v1095_v30 = vadd.f32 %v1094_v2, %v1093_v0  ;;  %v809_v37 = vadd.f32 %v1132_v33, %v745_v31 }
  0xeb   :  { %v1096_v4 = vpop.f32.mrf.mxu0  ;;  %v1135_v41 = vadd.f32 %v1134_v3, %v1133_v1 }
  0xec   :  { %v1136_v5 = vpop.f32.mrf.mxu1  ;;  %v748_v35 = vadd.f32 %v1095_v30, %v1621_v27 }
  0xed   :  { %v1097_v6 = vpop.f32.mrf.mxu0 }
  0xee   :  { %v1137_v7 = vpop.f32.mrf.mxu1  ;;  %v1098_v38 = vadd.f32 %v1097_v6, %v1096_v4  ;;  %v812_v46 = vadd.f32 %v1135_v41, %v748_v35 }
  0xef   :  { %v1099_v8 = vpop.f32.mrf.mxu0  ;;  %v1138_v54 = vadd.f32 %v1137_v7, %v1136_v5 }
  0xf0   :  { %v1139_v9 = vpop.f32.mrf.mxu1  ;;  %v753_v48 = vadd.f32 %v1098_v38, %v1621_v27 }
  0xf1   :  { %v1100_v10 = vpop.f32.mrf.mxu0 }
  0xf2   :  { %v1140_v11 = vpop.f32.mrf.mxu1  ;;  %v1101_v49 = vadd.f32 %v1100_v10, %v1099_v8  ;;  %v817_v60 = vadd.f32 %v1138_v54, %v753_v48 }
  0xf3   :  { %v1102_v12 = vpop.f32.mrf.mxu0  ;;  %v1141_v2 = vadd.f32 %v1140_v11, %v1139_v9 }
  0xf4   :  { %v1602_v13 = vpop.f32.mrf.mxu1  ;;  %v756_v61 = vadd.f32 %v1101_v49, %v1621_v27 }
  0xf5   :  { %v1103_v14 = vpop.f32.mrf.mxu0 }
  0xf6   :  { %v1604_v15 = vpop.f32.mrf.mxu1  ;;  %v1104_v58 = vadd.f32 %v1103_v14, %v1102_v12  ;;  %v820_v8 = vadd.f32 %v1141_v2, %v756_v61 }
  0xf7   :  { %v1105_v16 = vpop.f32.mrf.mxu0 }
  0xf8   :  { %v1606_v17 = vpop.f32.mrf.mxu1  ;;  %v761_v6 = vadd.f32 %v1104_v58, %v1621_v27 }
  0xf9   :  { %v1106_v18 = vpop.f32.mrf.mxu0 }
  0xfa   :  { %v1608_v19 = vpop.f32.mrf.mxu1  ;;  %v1107_v10 = vadd.f32 %v1106_v18, %v1105_v16 }
  0xfb   :  { %v1610_v20 = vpop.f32.mrf.mxu0 }
  0xfc   :  { %v1612_v21 = vpop.f32.mrf.mxu1  ;;  %v764_v31 = vadd.f32 %v1107_v10, %v1621_v27 }
  0xfd   :  { %v1614_v22 = vpop.f32.mrf.mxu0 }
  0xfe   :  { %v1616_v23 = vpop.f32.mrf.mxu1  ;;  %v1110_v16 = vadd.f32 %v1614_v22, %v1610_v20 }
  0xff   :  { %v1111_v25 = vpop.f32.mrf.mxu0 }
 0x100   :  { %v1151_v26 = vpop.f32.mrf.mxu1  ;;  %v1144_v25 = vadd.f32 %v1604_v15, %v1602_v13  ;;  %v1147_v13 = vadd.f32 %v1608_v19, %v1606_v17 }
 0x101   :  { %v1112_v28 = vpop.f32.mrf.mxu0 }
 0x102   :  { %v1152_v29 = vpop.f32.mrf.mxu1  ;;  %v828_v38 = vadd.f32 %v1147_v13, %v764_v31 }
 0x103   :  { %v1170_v32 = vpop.f32.mrf.mxu0  ;;  %v825_v29 = vadd.f32 %v1144_v25, %v761_v6 }
 0x104   :  { %v1210_v34 = vpop.f32.mrf.mxu1 }
 0x105   :  { %v1171_v36 = vpop.f32.mrf.mxu0 }
 0x106   :  { %v1172_v39 = vadd.f32 %v1171_v36, %v1170_v32  ;;  %v1211_v40 = vpop.f32.mrf.mxu1 }
 0x107   :  { %v1173_v42 = vpop.f32.mrf.mxu0  ;;  %v1212_v44 = vadd.f32 %v1211_v40, %v1210_v34 }
 0x108   :  { %v873_v43 = vadd.f32 %v1172_v39, %v809_v37  ;;  %v1213_v45 = vpop.f32.mrf.mxu1  ;;  %v769_v39 = vadd.f32 %v1110_v16, %v1621_v27 }
 0x109   :  { %v1174_v47 = vpop.f32.mrf.mxu0 }
 0x10a   :  { %v937_v50 = vadd.f32 %v1212_v44, %v873_v43  ;;  %v1175_v51 = vadd.f32 %v1174_v47, %v1173_v42  ;;  %v1214_v52 = vpop.f32.mrf.mxu1  ;;  %v1150_v42 = vadd.f32 %v1616_v23, %v1612_v21 }
 0x10b   :  { %v1176_v53 = vpop.f32.mrf.mxu0  ;;  %v1215_v56 = vadd.f32 %v1214_v52, %v1213_v45 }
 0x10c   :  { %966 = vst [vmem:[%s1662_s3] sm:$0xff] %v937_v50  ;;  %v876_v55 = vadd.f32 %v1175_v51, %v812_v46  ;;  %v1216_v57 = vpop.f32.mrf.mxu1  ;;  %v833_v45 = vadd.f32 %v1150_v42, %v769_v39 }
 0x10d   :  { %v1177_v59 = vpop.f32.mrf.mxu0 }
 0x10e   :  { %v940_v62 = vadd.f32 %v1215_v56, %v876_v55  ;;  %v1178_v63 = vadd.f32 %v1177_v59, %v1176_v53  ;;  %v1217_v0 = vpop.f32.mrf.mxu1 }
 0x10f   :  { %v1179_v1 = vpop.f32.mrf.mxu0  ;;  %v1218_v4 = vadd.f32 %v1217_v0, %v1216_v57 }
 0x110   :  { %967 = vst [vmem:[%s1662_s3 + $0x8] sm:$0xff] %v940_v62  ;;  %v881_v3 = vadd.f32 %v1178_v63, %v817_v60  ;;  %v1219_v5 = vpop.f32.mrf.mxu1 }
 0x111   :  { %v1180_v7 = vpop.f32.mrf.mxu0 }
 0x112   :  { %v945_v12 = vadd.f32 %v1218_v4, %v881_v3  ;;  %v1181_v14 = vadd.f32 %v1180_v7, %v1179_v1  ;;  %v1220_v24 = vpop.f32.mrf.mxu1 }
 0x113   :  { %v1182_v26 = vpop.f32.mrf.mxu0  ;;  %v1221_v11 = vadd.f32 %v1220_v24, %v1219_v5 }
 0x114   :  { %968 = vst [vmem:[%s1662_s3 + $0x10] sm:$0xff] %v945_v12  ;;  %v884_v9 = vadd.f32 %v1181_v14, %v820_v8  ;;  %v1222_v28 = vpop.f32.mrf.mxu1 }
 0x115   :  { %v1183_v30 = vpop.f32.mrf.mxu0 }
 0x116   :  { %v948_v18 = vadd.f32 %v1221_v11, %v884_v9  ;;  %v1184_v32 = vadd.f32 %v1183_v30, %v1182_v26  ;;  %v1223_v33 = vpop.f32.mrf.mxu1 }
 0x117   :  { %v1185_v34 = vpop.f32.mrf.mxu0  ;;  %v1224_v35 = vadd.f32 %v1223_v33, %v1222_v28 }
 0x118   :  { %969 = vst [vmem:[%s1662_s3 + $0x18] sm:$0xff] %v948_v18  ;;  %v889_v15 = vadd.f32 %v1184_v32, %v825_v29  ;;  %v1225_v36 = vpop.f32.mrf.mxu1 }
 0x119   :  { %v1186_v37 = vpop.f32.mrf.mxu0 }
 0x11a   :  { %v953_v40 = vadd.f32 %v1224_v35, %v889_v15  ;;  %v1187_v20 = vadd.f32 %v1186_v37, %v1185_v34  ;;  %v1226_v22 = vpop.f32.mrf.mxu1 }
 0x11b   :  { %v1188_v41 = vpop.f32.mrf.mxu0  ;;  %v1227_v19 = vadd.f32 %v1226_v22, %v1225_v36 }
 0x11c   :  { %970 = vst [vmem:[%s1662_s3 + $0x20] sm:$0xff] %v953_v40  ;;  %v892_v17 = vadd.f32 %v1187_v20, %v828_v38  ;;  %v1228_v43 = vpop.f32.mrf.mxu1 }
 0x11d   :  { %v1189_v44 = vpop.f32.mrf.mxu0 }
 0x11e   :  { %v956_v46 = vadd.f32 %v1227_v19, %v892_v17  ;;  %v1190_v47 = vadd.f32 %v1189_v44, %v1188_v41  ;;  %v1229_v48 = vpop.f32.mrf.mxu1 }
 0x11f   :  { %v1191_v27 = vpop.f32.mrf.mxu0  ;;  %v1230_v50 = vadd.f32 %v1229_v48, %v1228_v43 }
 0x120   :  { %971 = vst [vmem:[%s1662_s3 + $0x28] sm:$0xff] %v956_v46  ;;  %v897_v49 = vadd.f32 %v1190_v47, %v833_v45  ;;  %v1231_v21 = vpop.f32.mrf.mxu1 }
 0x121   :  { %v1192_v23 = vpop.f32.mrf.mxu0 }
 0x122   :  { %v961_v51 = vadd.f32 %v1230_v50, %v897_v49  ;;  %v1232_v52 = vpop.f32.mrf.mxu1 }
 0x124   :  { %972 = vst [vmem:[%s1662_s3 + $0x30] sm:$0x3] %v961_v51 }

</bundles_post_ra>
